<compile_context>
chip_gen: v5e
topology: v5e:2x2
jax: 0.10.0
libtpu: 0.0.40
codegen_flags: <defaults>
</compile_context>

<pallas_src>
import math

import jax
import jax.numpy as jnp
from jax.experimental import pallas as pl
from jax.experimental.pallas import tpu as pltpu

# ----------------------------- model hyper-params ----------------------------------
B = 2            # batch
S = 8            # sequence length
H = 32           # hidden size
NH = 2           # attention heads
DH = H // NH     # head dim
I = 64           # intermediate (FFN) size
L = 2            # number of encoder layers
VOCAB = 30
MAX_POS = 16
TYPE_VOCAB = 2
NUM_LABELS = 3
INIT_STD = 0.02  # config.initializer_range
LN_EPS = 1e-12


# --------------------------------- fused kernel ------------------------------------
def _encoder_kernel(emb_ref, mask_ref, emb_g_ref, emb_b_ref,
                    qkv_w_ref, qkv_b_ref, o_w_ref, o_b_ref, ln1_g_ref, ln1_b_ref,
                    i_w_ref, i_b_ref, o2_w_ref, o2_b_ref, ln2_g_ref, ln2_b_ref,
                    pool_w_ref, pool_b_ref, cls_w_ref, cls_b_ref,
                    seq_ref, scores_ref, logits_ref):
    l = pl.program_id(0)

    def _ln(x, g, b):
        mu = jnp.mean(x, axis=-1, keepdims=True)
        xc = x - mu
        var = jnp.mean(xc * xc, axis=-1, keepdims=True)
        return xc * jax.lax.rsqrt(var + LN_EPS) * g + b

    # ---- first grid step: embedding LayerNorm (no residual) seeds the carried state ----
    @pl.when(l == 0)
    def _():
        seq_ref[...] = _ln(emb_ref[...], emb_g_ref[...], emb_b_ref[...])

    h = seq_ref[...]                                    # [B*S, H] f32 residual stream
    hb = h.astype(jnp.bfloat16)

    # ---- fused Q/K/V projection: one MXU pass, 3H-wide output ----
    qkv = jnp.dot(hb, qkv_w_ref[0],
                  preferred_element_type=jnp.float32) + qkv_b_ref[0]   # [B*S, 3H] f32

    mask = mask_ref[...]                                # [B, 1, S] additive mask
    scale = 1.0 / math.sqrt(DH)
    q_all = qkv[:, :H] * scale                          # fold score scale into Q (once)
    k_all = qkv[:, H:2 * H]
    v_all = qkv[:, 2 * H:]

    ctx_heads = []
    for hd in range(NH):                                # static unroll over heads (NH=2)
        q_h = q_all[:, hd * DH:(hd + 1) * DH].reshape(B, S, DH)
        k_h = k_all[:, hd * DH:(hd + 1) * DH].reshape(B, S, DH)
        v_h = v_all[:, hd * DH:(hd + 1) * DH].reshape(B, S, DH)

        s = jnp.einsum("bqd,bkd->bqk",
                       q_h.astype(jnp.bfloat16), k_h.astype(jnp.bfloat16),
                       preferred_element_type=jnp.float32) + mask       # [B,S,S]
        scores_ref[hd] = s                              # pre-softmax scores (TinyBERT-style)

        mx = jnp.max(s, axis=-1, keepdims=True)
        e = jnp.exp(s - mx)
        p = e * pl.reciprocal(jnp.sum(e, axis=-1, keepdims=True), approx=True)
        ctx = jnp.einsum("bqk,bkd->bqd",
                         p.astype(jnp.bfloat16), v_h.astype(jnp.bfloat16),
                         preferred_element_type=jnp.float32)            # [B,S,DH]
        ctx_heads.append(ctx.reshape(B * S, DH))

    ctx = jnp.concatenate(ctx_heads, axis=1)            # [B*S, H]  head-merge in VMEM

    # ---- attention output projection + residual LayerNorm ----
    attn_out = jnp.dot(ctx.astype(jnp.bfloat16), o_w_ref[0],
                       preferred_element_type=jnp.float32) + o_b_ref[0]
    h1 = _ln(attn_out + h, ln1_g_ref[0], ln1_b_ref[0])

    # ---- feed-forward (GELU, tanh approx) + residual LayerNorm ----
    # TODO(synk): HF BERT uses the exact erf-GELU; tanh approximation differs at ~1e-3.
    inter = jnp.dot(h1.astype(jnp.bfloat16), i_w_ref[0],
                    preferred_element_type=jnp.float32) + i_b_ref[0]
    c = math.sqrt(2.0 / math.pi)
    inter = 0.5 * inter * (1.0 + jnp.tanh(c * (inter + 0.044715 * inter * inter * inter)))
    ffn_out = jnp.dot(inter.astype(jnp.bfloat16), o2_w_ref[0],
                      preferred_element_type=jnp.float32) + o2_b_ref[0]
    h2 = _ln(ffn_out + h1, ln2_g_ref[0], ln2_b_ref[0])

    seq_ref[...] = h2                                   # carry to next layer / final output

    # ---- last grid step: pooler (tanh on [CLS]) + classifier epilogue ----
    @pl.when(l == pl.num_programs(0) - 1)
    def _():
        first = h2.reshape(B, S, H)[:, 0, :]            # [B, H]  first token of each example
        pooled = jnp.tanh(jnp.dot(first.astype(jnp.bfloat16), pool_w_ref[...],
                                  preferred_element_type=jnp.float32) + pool_b_ref[...])
        # dropout(hidden_dropout_prob) is identity in eval mode
        logits_ref[...] = jnp.dot(pooled.astype(jnp.bfloat16), cls_w_ref[...],
                                  preferred_element_type=jnp.float32) + cls_b_ref[...]


def _fused_encoder(emb, mask, emb_g, emb_b, qkv_w, qkv_b, o_w, o_b, ln1g, ln1b,
                   i_w, i_b, o2_w, o2_b, ln2g, ln2b, pool_w, pool_b, cls_w, cls_b):
    BS = emb.shape[0]

    def glob(shape):
        return pl.BlockSpec(shape, lambda l, _s=shape: (0,) * len(_s))

    def per_layer(shape):
        return pl.BlockSpec((1,) + shape, lambda l: (l, 0, 0))

    return pl.pallas_call(
        _encoder_kernel,
        out_shape=(jax.ShapeDtypeStruct((BS, H), jnp.float32),              # final hidden
                   jax.ShapeDtypeStruct((L * NH, B, S, S), jnp.float32),    # attn scores
                   jax.ShapeDtypeStruct((B, NUM_LABELS), jnp.float32)),     # logits
        grid=(L,),
        in_specs=[glob((BS, H)), glob((B, 1, S)), glob((1, H)), glob((1, H)),
                  per_layer((H, 3 * H)), per_layer((1, 3 * H)),
                  per_layer((H, H)), per_layer((1, H)),
                  per_layer((1, H)), per_layer((1, H)),
                  per_layer((H, I)), per_layer((1, I)),
                  per_layer((I, H)), per_layer((1, H)),
                  per_layer((1, H)), per_layer((1, H)),
                  glob((H, H)), glob((1, H)),
                  glob((H, NUM_LABELS)), glob((1, NUM_LABELS))],
        out_specs=(glob((BS, H)),
                   pl.BlockSpec((NH, B, S, S), lambda l: (l, 0, 0, 0)),
                   glob((B, NUM_LABELS))),
        compiler_params=pltpu.CompilerParams(
            dimension_semantics=("arbitrary",)),   # layers carry hidden state sequentially
    )(emb, mask, emb_g, emb_b, qkv_w, qkv_b, o_w, o_b, ln1g, ln1b,
      i_w, i_b, o2_w, o2_b, ln2g, ln2b, pool_w, pool_b, cls_w, cls_b)


# ---------------------------------- parameters -------------------------------------
def init_params(key):
    keys = iter(jax.random.split(key, 128))
    nrm = lambda shape: INIT_STD * jax.random.normal(next(keys), shape, jnp.float32)
    zeros = lambda shape: jnp.zeros(shape, jnp.float32)
    ones = lambda shape: jnp.ones(shape, jnp.float32)

    params = {
        "word_emb": nrm((VOCAB, H)),
        "pos_emb": nrm((MAX_POS, H)),
        "type_emb": nrm((TYPE_VOCAB, H)),
        "emb_ln_g": ones((H,)), "emb_ln_b": zeros((H,)),
        "pooler_w": nrm((H, H)), "pooler_b": zeros((H,)),
        "cls_w": nrm((H, NUM_LABELS)), "cls_b": zeros((NUM_LABELS,)),
        "layers": [],
    }
    for _ in range(L):
        params["layers"].append({
            "q_w": nrm((H, H)), "q_b": zeros((H,)),
            "k_w": nrm((H, H)), "k_b": zeros((H,)),
            "v_w": nrm((H, H)), "v_b": zeros((H,)),
            "o_w": nrm((H, H)), "o_b": zeros((H,)),
            "attn_ln_g": ones((H,)), "attn_ln_b": zeros((H,)),
            "i_w": nrm((H, I)), "i_b": zeros((I,)),
            "o2_w": nrm((I, H)), "o2_b": zeros((H,)),
            "ffn_ln_g": ones((H,)), "ffn_ln_b": zeros((H,)),
        })
    return params


# ---------------------------------- forward pass -----------------------------------
def bert_for_glue_simple(params, input_ids, attention_mask, token_type_ids, labels=None):
    Bn, Sn = input_ids.shape

    # --- embeddings (table gathers are plain-JAX glue; LN runs inside the fused kernel) ---
    pos_ids = jnp.arange(Sn)[None, :]
    emb = (params["word_emb"][input_ids]
           + params["pos_emb"][pos_ids]
           + params["type_emb"][token_type_ids]).reshape(Bn * Sn, H).astype(jnp.float32)

    # --- additive attention mask [B, 1, S] ---
    mask_add = ((1.0 - attention_mask.astype(jnp.float32)) * -10000.0).reshape(Bn, 1, Sn)

    # --- stack per-layer weights (weights in bf16 for the MXU, biases/LN params in f32) ---
    Ls = params["layers"]
    qkv_w = jnp.stack([jnp.concatenate([lp["q_w"], lp["k_w"], lp["v_w"]], axis=1)
                       for lp in Ls]).astype(jnp.bfloat16)                       # [L,H,3H]
    qkv_b = jnp.stack([jnp.concatenate([lp["q_b"], lp["k_b"], lp["v_b"]])[None, :]
                       for lp in Ls])                                            # [L,1,3H]
    o_w = jnp.stack([lp["o_w"] for lp in Ls]).astype(jnp.bfloat16)
    o_b = jnp.stack([lp["o_b"][None, :] for lp in Ls])
    ln1g = jnp.stack([lp["attn_ln_g"][None, :] for lp in Ls])
    ln1b = jnp.stack([lp["attn_ln_b"][None, :] for lp in Ls])
    i_w = jnp.stack([lp["i_w"] for lp in Ls]).astype(jnp.bfloat16)
    i_b = jnp.stack([lp["i_b"][None, :] for lp in Ls])
    o2_w = jnp.stack([lp["o2_w"] for lp in Ls]).astype(jnp.bfloat16)
    o2_b = jnp.stack([lp["o2_b"][None, :] for lp in Ls])
    ln2g = jnp.stack([lp["ffn_ln_g"][None, :] for lp in Ls])
    ln2b = jnp.stack([lp["ffn_ln_b"][None, :] for lp in Ls])

    seq_flat, scores, logits = _fused_encoder(
        emb, mask_add,
        params["emb_ln_g"].reshape(1, H), params["emb_ln_b"].reshape(1, H),
        qkv_w, qkv_b, o_w, o_b, ln1g, ln1b, i_w, i_b, o2_w, o2_b, ln2g, ln2b,
        params["pooler_w"].astype(jnp.bfloat16), params["pooler_b"].reshape(1, H),
        params["cls_w"].astype(jnp.bfloat16), params["cls_b"].reshape(1, NUM_LABELS))

    sequence_output = seq_flat.reshape(Bn, Sn, H)
    # kernel emits scores head-major; reorder (tiny array) to [L, B, NH, S, S]
    attention_output = scores.reshape(L, NH, Bn, Sn, Sn).transpose(0, 2, 1, 3, 4)

    if labels is not None:
        # tiny loss reduction kept in plain JAX glue
        if NUM_LABELS == 1:
            loss = jnp.mean((logits.reshape(-1) - labels.reshape(-1).astype(jnp.float32)) ** 2)
        else:
            logp = jax.nn.log_softmax(logits, axis=-1)
            loss = -jnp.mean(jnp.take_along_axis(logp, labels[:, None], axis=-1))
        return logits, sequence_output, attention_output, loss
    return logits


# --------------------------------------- main --------------------------------------
if __name__ == "__main__":
    key = jax.random.PRNGKey(0)
    pkey, k1, k2 = jax.random.split(key, 3)

    params = init_params(pkey)
    input_ids = jax.random.randint(k1, (B, S), 0, VOCAB, dtype=jnp.int32)
    token_type_ids = jax.random.randint(k2, (B, S), 0, TYPE_VOCAB, dtype=jnp.int32)
    attention_mask = jnp.ones((B, S), dtype=jnp.int32)
    labels = jnp.array([0, 2], dtype=jnp.int32)

    forward = jax.jit(bert_for_glue_simple)
    logits, seq_out, attn_out, loss = forward(
        params, input_ids, attention_mask, token_type_ids, labels)
    jax.block_until_ready((logits, seq_out, attn_out, loss))

    assert logits.shape == (B, NUM_LABELS)
    assert seq_out.shape == (B, S, H)
    assert attn_out.shape == (L, B, NH, S, S)
    assert bool(jnp.isfinite(loss))
    print("KERNEL_OK")
</pallas_src>

<mosaic_0001>
module attributes {stable_mosaic.version = 11 : i64} {
  func.func @_encoder_kernel(%arg0: i32, %arg1: memref<16x32xf32, #tpu.memory_space<vmem>>, %arg2: memref<2x1x8xf32, #tpu.memory_space<vmem>>, %arg3: memref<1x32xf32, #tpu.memory_space<vmem>>, %arg4: memref<1x32xf32, #tpu.memory_space<vmem>>, %arg5: memref<1x32x96xbf16, #tpu.memory_space<vmem>>, %arg6: memref<1x1x96xf32, #tpu.memory_space<vmem>>, %arg7: memref<1x32x32xbf16, #tpu.memory_space<vmem>>, %arg8: memref<1x1x32xf32, #tpu.memory_space<vmem>>, %arg9: memref<1x1x32xf32, #tpu.memory_space<vmem>>, %arg10: memref<1x1x32xf32, #tpu.memory_space<vmem>>, %arg11: memref<1x32x64xbf16, #tpu.memory_space<vmem>>, %arg12: memref<1x1x64xf32, #tpu.memory_space<vmem>>, %arg13: memref<1x64x32xbf16, #tpu.memory_space<vmem>>, %arg14: memref<1x1x32xf32, #tpu.memory_space<vmem>>, %arg15: memref<1x1x32xf32, #tpu.memory_space<vmem>>, %arg16: memref<1x1x32xf32, #tpu.memory_space<vmem>>, %arg17: memref<32x32xbf16, #tpu.memory_space<vmem>>, %arg18: memref<1x32xf32, #tpu.memory_space<vmem>>, %arg19: memref<32x3xbf16, #tpu.memory_space<vmem>>, %arg20: memref<1x3xf32, #tpu.memory_space<vmem>>, %arg21: memref<16x32xf32, #tpu.memory_space<vmem>>, %arg22: memref<2x2x8x8xf32, #tpu.memory_space<vmem>>, %arg23: memref<2x3xf32, #tpu.memory_space<vmem>>) attributes {dimension_semantics = [#tpu.dimension_semantics<arbitrary>], iteration_bounds = array<i64: 2>, scalar_prefetch = 0 : i64, scratch_operands = 0 : i64, tpu.core_type = #tpu.core_type<tc>, window_params = [{pipeline_mode = #tpu.pipeline_mode<synchronous>, transform_indices = @transform_0, window_bounds = array<i64: 16, 32>}, {pipeline_mode = #tpu.pipeline_mode<synchronous>, transform_indices = @transform_1, window_bounds = array<i64: 2, 1, 8>}, {pipeline_mode = #tpu.pipeline_mode<synchronous>, transform_indices = @transform_2, window_bounds = array<i64: 1, 32>}, {pipeline_mode = #tpu.pipeline_mode<synchronous>, transform_indices = @transform_3, window_bounds = array<i64: 1, 32>}, {transform_indices = @transform_4, window_bounds = array<i64: 1, 32, 96>}, {transform_indices = @transform_5, window_bounds = array<i64: 1, 1, 96>}, {transform_indices = @transform_6, window_bounds = array<i64: 1, 32, 32>}, {transform_indices = @transform_7, window_bounds = array<i64: 1, 1, 32>}, {transform_indices = @transform_8, window_bounds = array<i64: 1, 1, 32>}, {transform_indices = @transform_9, window_bounds = array<i64: 1, 1, 32>}, {transform_indices = @transform_10, window_bounds = array<i64: 1, 32, 64>}, {transform_indices = @transform_11, window_bounds = array<i64: 1, 1, 64>}, {transform_indices = @transform_12, window_bounds = array<i64: 1, 64, 32>}, {transform_indices = @transform_13, window_bounds = array<i64: 1, 1, 32>}, {transform_indices = @transform_14, window_bounds = array<i64: 1, 1, 32>}, {transform_indices = @transform_15, window_bounds = array<i64: 1, 1, 32>}, {pipeline_mode = #tpu.pipeline_mode<synchronous>, transform_indices = @transform_16, window_bounds = array<i64: 32, 32>}, {pipeline_mode = #tpu.pipeline_mode<synchronous>, transform_indices = @transform_17, window_bounds = array<i64: 1, 32>}, {pipeline_mode = #tpu.pipeline_mode<synchronous>, transform_indices = @transform_18, window_bounds = array<i64: 32, 3>}, {pipeline_mode = #tpu.pipeline_mode<synchronous>, transform_indices = @transform_19, window_bounds = array<i64: 1, 3>}, {pipeline_mode = #tpu.pipeline_mode<synchronous>, transform_indices = @transform_20, window_bounds = array<i64: 16, 32>}, {transform_indices = @transform_21, window_bounds = array<i64: 2, 2, 8, 8>}, {pipeline_mode = #tpu.pipeline_mode<synchronous>, transform_indices = @transform_22, window_bounds = array<i64: 2, 3>}]} {
    %c0_i32 = arith.constant 0 : i32
    %0 = arith.cmpi eq, %arg0, %c0_i32 : i32
    %1 = arith.extui %0 : i1 to i32
    %c0_i32_0 = arith.constant 0 : i32
    %2 = arith.cmpi ne, %1, %c0_i32_0 : i32
    scf.if %2 {
      %c0_77 = arith.constant 0 : index
      %c0_78 = arith.constant 0 : index
      %166 = vector.load %arg1[%c0_77, %c0_78] : memref<16x32xf32, #tpu.memory_space<vmem>>, vector<16x32xf32>
      %c0_79 = arith.constant 0 : index
      %c0_80 = arith.constant 0 : index
      %167 = vector.load %arg3[%c0_79, %c0_80] : memref<1x32xf32, #tpu.memory_space<vmem>>, vector<1x32xf32>
      %c0_81 = arith.constant 0 : index
      %c0_82 = arith.constant 0 : index
      %168 = vector.load %arg4[%c0_81, %c0_82] : memref<1x32xf32, #tpu.memory_space<vmem>>, vector<1x32xf32>
      %cst_83 = arith.constant dense<0.000000e+00> : vector<16xf32>
      %169 = vector.multi_reduction <add>, %166, %cst_83 [1] : vector<16x32xf32> to vector<16xf32>
      %170 = vector.shape_cast %169 : vector<16xf32> to vector<16x1xf32>
      %cst_84 = arith.constant 3.200000e+01 : f32
      %171 = vector.broadcast %cst_84 : f32 to vector<16x1xf32>
      %172 = arith.divf %170, %171 : vector<16x1xf32>
      %173 = vector.broadcast %172 : vector<16x1xf32> to vector<16x32xf32>
      %174 = arith.subf %166, %173 : vector<16x32xf32>
      %175 = arith.mulf %174, %174 : vector<16x32xf32>
      %cst_85 = arith.constant dense<0.000000e+00> : vector<16xf32>
      %176 = vector.multi_reduction <add>, %175, %cst_85 [1] : vector<16x32xf32> to vector<16xf32>
      %177 = vector.shape_cast %176 : vector<16xf32> to vector<16x1xf32>
      %cst_86 = arith.constant 3.200000e+01 : f32
      %178 = vector.broadcast %cst_86 : f32 to vector<16x1xf32>
      %179 = arith.divf %177, %178 : vector<16x1xf32>
      %cst_87 = arith.constant 9.99999996E-13 : f32
      %180 = vector.broadcast %cst_87 : f32 to vector<16x1xf32>
      %181 = arith.addf %179, %180 : vector<16x1xf32>
      %182 = math.rsqrt %181 : vector<16x1xf32>
      %183 = vector.broadcast %182 : vector<16x1xf32> to vector<16x32xf32>
      %184 = arith.mulf %174, %183 : vector<16x32xf32>
      %185 = vector.broadcast %167 : vector<1x32xf32> to vector<16x32xf32>
      %186 = arith.mulf %184, %185 : vector<16x32xf32>
      %187 = vector.broadcast %168 : vector<1x32xf32> to vector<16x32xf32>
      %188 = arith.addf %186, %187 : vector<16x32xf32>
      %c0_88 = arith.constant 0 : index
      %c0_89 = arith.constant 0 : index
      %189 = vector.load %arg21[%c0_88, %c0_89] : memref<16x32xf32, #tpu.memory_space<vmem>>, vector<16x32xf32>
      tpu.vector_store %arg21[%c0_88, %c0_89], %188 {strides = array<i32>} : memref<16x32xf32, #tpu.memory_space<vmem>>, vector<16x32xf32>,
    } else {
    }
    %c0 = arith.constant 0 : index
    %c0_1 = arith.constant 0 : index
    %3 = vector.load %arg21[%c0, %c0_1] : memref<16x32xf32, #tpu.memory_space<vmem>>, vector<16x32xf32>
    %4 = arith.truncf %3 : vector<16x32xf32> to vector<16x32xbf16>
    %c0_2 = arith.constant 0 : index
    %c0_3 = arith.constant 0 : index
    %c0_4 = arith.constant 0 : index
    %5 = vector.load %arg5[%c0_2, %c0_3, %c0_4] : memref<1x32x96xbf16, #tpu.memory_space<vmem>>, vector<1x32x96xbf16>
    %6 = vector.shape_cast %5 : vector<1x32x96xbf16> to vector<32x96xbf16>
    %cst = arith.constant dense<0.000000e+00> : vector<16x96xf32>
    %7 = tpu.matmul %4, %6, %cst {dimension_numbers = #tpu.dot_dimension_numbers<[1], [0], [0], [1], [0, 0, 1, 1], [], []>} : vector<16x32xbf16>, vector<32x96xbf16>, vector<16x96xf32> -> vector<16x96xf32>
    %c0_5 = arith.constant 0 : index
    %c0_6 = arith.constant 0 : index
    %c0_7 = arith.constant 0 : index
    %8 = vector.load %arg6[%c0_5, %c0_6, %c0_7] : memref<1x1x96xf32, #tpu.memory_space<vmem>>, vector<1x1x96xf32>
    %9 = vector.shape_cast %8 : vector<1x1x96xf32> to vector<1x96xf32>
    %10 = vector.broadcast %9 : vector<1x96xf32> to vector<16x96xf32>
    %11 = arith.addf %7, %10 : vector<16x96xf32>
    %c0_8 = arith.constant 0 : index
    %c0_9 = arith.constant 0 : index
    %c0_10 = arith.constant 0 : index
    %12 = vector.load %arg2[%c0_8, %c0_9, %c0_10] : memref<2x1x8xf32, #tpu.memory_space<vmem>>, vector<2x1x8xf32>
    %13 = vector.extract_strided_slice %11 {offsets = [0, 0], sizes = [16, 32], strides = [1, 1]} : vector<16x96xf32> to vector<16x32xf32>
    %cst_11 = arith.constant 2.500000e-01 : f32
    %14 = vector.broadcast %cst_11 : f32 to vector<16x32xf32>
    %15 = arith.mulf %13, %14 : vector<16x32xf32>
    %16 = vector.extract_strided_slice %11 {offsets = [0, 32], sizes = [16, 32], strides = [1, 1]} : vector<16x96xf32> to vector<16x32xf32>
    %17 = vector.extract_strided_slice %11 {offsets = [0, 64], sizes = [16, 32], strides = [1, 1]} : vector<16x96xf32> to vector<16x32xf32>
    %18 = vector.extract_strided_slice %15 {offsets = [0, 0], sizes = [16, 16], strides = [1, 1]} : vector<16x32xf32> to vector<16x16xf32>
    %19 = vector.shape_cast %18 : vector<16x16xf32> to vector<2x8x16xf32>
    %20 = vector.extract_strided_slice %16 {offsets = [0, 0], sizes = [16, 16], strides = [1, 1]} : vector<16x32xf32> to vector<16x16xf32>
    %21 = vector.shape_cast %20 : vector<16x16xf32> to vector<2x8x16xf32>
    %22 = vector.extract_strided_slice %17 {offsets = [0, 0], sizes = [16, 16], strides = [1, 1]} : vector<16x32xf32> to vector<16x16xf32>
    %23 = vector.shape_cast %22 : vector<16x16xf32> to vector<2x8x16xf32>
    %24 = arith.truncf %19 : vector<2x8x16xf32> to vector<2x8x16xbf16>
    %25 = arith.truncf %21 : vector<2x8x16xf32> to vector<2x8x16xbf16>
    "tpu.trace_start"() <{level = 10 : i32, message = "bqd,bkd->bqk"}> : () -> ()
    %cst_12 = arith.constant dense<0.000000e+00> : vector<2x8x8xf32>
    %26 = tpu.matmul %24, %25, %cst_12 {dimension_numbers = #tpu.dot_dimension_numbers<[2], [2], [1], [1], [0, 0, 0, 1, 1, 1], [0], [0]>} : vector<2x8x16xbf16>, vector<2x8x16xbf16>, vector<2x8x8xf32> -> vector<2x8x8xf32>
    "tpu.trace_stop"() : () -> ()
    %27 = vector.broadcast %12 : vector<2x1x8xf32> to vector<2x8x8xf32>
    %28 = arith.addf %26, %27 : vector<2x8x8xf32>
    %c0_13 = arith.constant 0 : index
    %c0_14 = arith.constant 0 : index
    %c0_15 = arith.constant 0 : index
    %c0_16 = arith.constant 0 : index
    %29 = vector.load %arg22[%c0_13, %c0_14, %c0_15, %c0_16] : memref<2x2x8x8xf32, #tpu.memory_space<vmem>>, vector<1x2x8x8xf32>
    %30 = vector.shape_cast %29 : vector<1x2x8x8xf32> to vector<2x8x8xf32>
    %31 = vector.shape_cast %28 : vector<2x8x8xf32> to vector<1x2x8x8xf32>
    tpu.vector_store %arg22[%c0_13, %c0_14, %c0_15, %c0_16], %31 {strides = array<i32>} : memref<2x2x8x8xf32, #tpu.memory_space<vmem>>, vector<1x2x8x8xf32>,
    %cst_17 = arith.constant dense<0xFF800000> : vector<2x8xf32>
    %32 = vector.multi_reduction <maximumf>, %28, %cst_17 [2] : vector<2x8x8xf32> to vector<2x8xf32>
    %33 = vector.shape_cast %32 : vector<2x8xf32> to vector<2x8x1xf32>
    %34 = vector.broadcast %33 : vector<2x8x1xf32> to vector<2x8x8xf32>
    %35 = arith.subf %28, %34 : vector<2x8x8xf32>
    %36 = math.exp %35 : vector<2x8x8xf32>
    %cst_18 = arith.constant dense<0.000000e+00> : vector<2x8xf32>
    %37 = vector.multi_reduction <add>, %36, %cst_18 [2] : vector<2x8x8xf32> to vector<2x8xf32>
    %38 = vector.shape_cast %37 : vector<2x8xf32> to vector<2x8x1xf32>
    %39 = tpu.reciprocal %38 {approx = true} : vector<2x8x1xf32> -> vector<2x8x1xf32>
    %40 = vector.broadcast %39 : vector<2x8x1xf32> to vector<2x8x8xf32>
    %41 = arith.mulf %36, %40 : vector<2x8x8xf32>
    %42 = arith.truncf %41 : vector<2x8x8xf32> to vector<2x8x8xbf16>
    %43 = arith.truncf %23 : vector<2x8x16xf32> to vector<2x8x16xbf16>
    "tpu.trace_start"() <{level = 10 : i32, message = "bqk,bkd->bqd"}> : () -> ()
    %cst_19 = arith.constant dense<0.000000e+00> : vector<2x8x16xf32>
    %44 = tpu.matmul %42, %43, %cst_19 {dimension_numbers = #tpu.dot_dimension_numbers<[2], [1], [1], [2], [0, 0, 0, 1, 1, 2], [0], [0]>} : vector<2x8x8xbf16>, vector<2x8x16xbf16>, vector<2x8x16xf32> -> vector<2x8x16xf32>
    "tpu.trace_stop"() : () -> ()
    %45 = vector.shape_cast %44 : vector<2x8x16xf32> to vector<16x16xf32>
    %46 = vector.extract_strided_slice %15 {offsets = [0, 16], sizes = [16, 16], strides = [1, 1]} : vector<16x32xf32> to vector<16x16xf32>
    %47 = vector.shape_cast %46 : vector<16x16xf32> to vector<2x8x16xf32>
    %48 = vector.extract_strided_slice %16 {offsets = [0, 16], sizes = [16, 16], strides = [1, 1]} : vector<16x32xf32> to vector<16x16xf32>
    %49 = vector.shape_cast %48 : vector<16x16xf32> to vector<2x8x16xf32>
    %50 = vector.extract_strided_slice %17 {offsets = [0, 16], sizes = [16, 16], strides = [1, 1]} : vector<16x32xf32> to vector<16x16xf32>
    %51 = vector.shape_cast %50 : vector<16x16xf32> to vector<2x8x16xf32>
    %52 = arith.truncf %47 : vector<2x8x16xf32> to vector<2x8x16xbf16>
    %53 = arith.truncf %49 : vector<2x8x16xf32> to vector<2x8x16xbf16>
    "tpu.trace_start"() <{level = 10 : i32, message = "bqd,bkd->bqk"}> : () -> ()
    %cst_20 = arith.constant dense<0.000000e+00> : vector<2x8x8xf32>
    %54 = tpu.matmul %52, %53, %cst_20 {dimension_numbers = #tpu.dot_dimension_numbers<[2], [2], [1], [1], [0, 0, 0, 1, 1, 1], [0], [0]>} : vector<2x8x16xbf16>, vector<2x8x16xbf16>, vector<2x8x8xf32> -> vector<2x8x8xf32>
    "tpu.trace_stop"() : () -> ()
    %55 = vector.broadcast %12 : vector<2x1x8xf32> to vector<2x8x8xf32>
    %56 = arith.addf %54, %55 : vector<2x8x8xf32>
    %c1 = arith.constant 1 : index
    %c0_21 = arith.constant 0 : index
    %c0_22 = arith.constant 0 : index
    %c0_23 = arith.constant 0 : index
    %57 = vector.load %arg22[%c1, %c0_21, %c0_22, %c0_23] : memref<2x2x8x8xf32, #tpu.memory_space<vmem>>, vector<1x2x8x8xf32>
    %58 = vector.shape_cast %57 : vector<1x2x8x8xf32> to vector<2x8x8xf32>
    %59 = vector.shape_cast %56 : vector<2x8x8xf32> to vector<1x2x8x8xf32>
    tpu.vector_store %arg22[%c1, %c0_21, %c0_22, %c0_23], %59 {strides = array<i32>} : memref<2x2x8x8xf32, #tpu.memory_space<vmem>>, vector<1x2x8x8xf32>,
    %cst_24 = arith.constant dense<0xFF800000> : vector<2x8xf32>
    %60 = vector.multi_reduction <maximumf>, %56, %cst_24 [2] : vector<2x8x8xf32> to vector<2x8xf32>
    %61 = vector.shape_cast %60 : vector<2x8xf32> to vector<2x8x1xf32>
    %62 = vector.broadcast %61 : vector<2x8x1xf32> to vector<2x8x8xf32>
    %63 = arith.subf %56, %62 : vector<2x8x8xf32>
    %64 = math.exp %63 : vector<2x8x8xf32>
    %cst_25 = arith.constant dense<0.000000e+00> : vector<2x8xf32>
    %65 = vector.multi_reduction <add>, %64, %cst_25 [2] : vector<2x8x8xf32> to vector<2x8xf32>
    %66 = vector.shape_cast %65 : vector<2x8xf32> to vector<2x8x1xf32>
    %67 = tpu.reciprocal %66 {approx = true} : vector<2x8x1xf32> -> vector<2x8x1xf32>
    %68 = vector.broadcast %67 : vector<2x8x1xf32> to vector<2x8x8xf32>
    %69 = arith.mulf %64, %68 : vector<2x8x8xf32>
    %70 = arith.truncf %69 : vector<2x8x8xf32> to vector<2x8x8xbf16>
    %71 = arith.truncf %51 : vector<2x8x16xf32> to vector<2x8x16xbf16>
    "tpu.trace_start"() <{level = 10 : i32, message = "bqk,bkd->bqd"}> : () -> ()
    %cst_26 = arith.constant dense<0.000000e+00> : vector<2x8x16xf32>
    %72 = tpu.matmul %70, %71, %cst_26 {dimension_numbers = #tpu.dot_dimension_numbers<[2], [1], [1], [2], [0, 0, 0, 1, 1, 2], [0], [0]>} : vector<2x8x8xbf16>, vector<2x8x16xbf16>, vector<2x8x16xf32> -> vector<2x8x16xf32>
    "tpu.trace_stop"() : () -> ()
    %73 = vector.shape_cast %72 : vector<2x8x16xf32> to vector<16x16xf32>
    %74 = tpu.concatenate %45, %73 in 1 : vector<16x16xf32>, vector<16x16xf32> -> vector<16x32xf32>
    %75 = arith.truncf %74 : vector<16x32xf32> to vector<16x32xbf16>
    %c0_27 = arith.constant 0 : index
    %c0_28 = arith.constant 0 : index
    %c0_29 = arith.constant 0 : index
    %76 = vector.load %arg7[%c0_27, %c0_28, %c0_29] : memref<1x32x32xbf16, #tpu.memory_space<vmem>>, vector<1x32x32xbf16>
    %77 = vector.shape_cast %76 : vector<1x32x32xbf16> to vector<32x32xbf16>
    %cst_30 = arith.constant dense<0.000000e+00> : vector<16x32xf32>
    %78 = tpu.matmul %75, %77, %cst_30 {dimension_numbers = #tpu.dot_dimension_numbers<[1], [0], [0], [1], [0, 0, 1, 1], [], []>} : vector<16x32xbf16>, vector<32x32xbf16>, vector<16x32xf32> -> vector<16x32xf32>
    %c0_31 = arith.constant 0 : index
    %c0_32 = arith.constant 0 : index
    %c0_33 = arith.constant 0 : index
    %79 = vector.load %arg8[%c0_31, %c0_32, %c0_33] : memref<1x1x32xf32, #tpu.memory_space<vmem>>, vector<1x1x32xf32>
    %80 = vector.shape_cast %79 : vector<1x1x32xf32> to vector<1x32xf32>
    %81 = vector.broadcast %80 : vector<1x32xf32> to vector<16x32xf32>
    %82 = arith.addf %78, %81 : vector<16x32xf32>
    %83 = arith.addf %82, %3 : vector<16x32xf32>
    %c0_34 = arith.constant 0 : index
    %c0_35 = arith.constant 0 : index
    %c0_36 = arith.constant 0 : index
    %84 = vector.load %arg9[%c0_34, %c0_35, %c0_36] : memref<1x1x32xf32, #tpu.memory_space<vmem>>, vector<1x1x32xf32>
    %85 = vector.shape_cast %84 : vector<1x1x32xf32> to vector<1x32xf32>
    %c0_37 = arith.constant 0 : index
    %c0_38 = arith.constant 0 : index
    %c0_39 = arith.constant 0 : index
    %86 = vector.load %arg10[%c0_37, %c0_38, %c0_39] : memref<1x1x32xf32, #tpu.memory_space<vmem>>, vector<1x1x32xf32>
    %87 = vector.shape_cast %86 : vector<1x1x32xf32> to vector<1x32xf32>
    %cst_40 = arith.constant dense<0.000000e+00> : vector<16xf32>
    %88 = vector.multi_reduction <add>, %83, %cst_40 [1] : vector<16x32xf32> to vector<16xf32>
    %89 = vector.shape_cast %88 : vector<16xf32> to vector<16x1xf32>
    %cst_41 = arith.constant 3.200000e+01 : f32
    %90 = vector.broadcast %cst_41 : f32 to vector<16x1xf32>
    %91 = arith.divf %89, %90 : vector<16x1xf32>
    %92 = vector.broadcast %91 : vector<16x1xf32> to vector<16x32xf32>
    %93 = arith.subf %83, %92 : vector<16x32xf32>
    %94 = arith.mulf %93, %93 : vector<16x32xf32>
    %cst_42 = arith.constant dense<0.000000e+00> : vector<16xf32>
    %95 = vector.multi_reduction <add>, %94, %cst_42 [1] : vector<16x32xf32> to vector<16xf32>
    %96 = vector.shape_cast %95 : vector<16xf32> to vector<16x1xf32>
    %cst_43 = arith.constant 3.200000e+01 : f32
    %97 = vector.broadcast %cst_43 : f32 to vector<16x1xf32>
    %98 = arith.divf %96, %97 : vector<16x1xf32>
    %cst_44 = arith.constant 9.99999996E-13 : f32
    %99 = vector.broadcast %cst_44 : f32 to vector<16x1xf32>
    %100 = arith.addf %98, %99 : vector<16x1xf32>
    %101 = math.rsqrt %100 : vector<16x1xf32>
    %102 = vector.broadcast %101 : vector<16x1xf32> to vector<16x32xf32>
    %103 = arith.mulf %93, %102 : vector<16x32xf32>
    %104 = vector.broadcast %85 : vector<1x32xf32> to vector<16x32xf32>
    %105 = arith.mulf %103, %104 : vector<16x32xf32>
    %106 = vector.broadcast %87 : vector<1x32xf32> to vector<16x32xf32>
    %107 = arith.addf %105, %106 : vector<16x32xf32>
    %108 = arith.truncf %107 : vector<16x32xf32> to vector<16x32xbf16>
    %c0_45 = arith.constant 0 : index
    %c0_46 = arith.constant 0 : index
    %c0_47 = arith.constant 0 : index
    %109 = vector.load %arg11[%c0_45, %c0_46, %c0_47] : memref<1x32x64xbf16, #tpu.memory_space<vmem>>, vector<1x32x64xbf16>
    %110 = vector.shape_cast %109 : vector<1x32x64xbf16> to vector<32x64xbf16>
    %cst_48 = arith.constant dense<0.000000e+00> : vector<16x64xf32>
    %111 = tpu.matmul %108, %110, %cst_48 {dimension_numbers = #tpu.dot_dimension_numbers<[1], [0], [0], [1], [0, 0, 1, 1], [], []>} : vector<16x32xbf16>, vector<32x64xbf16>, vector<16x64xf32> -> vector<16x64xf32>
    %c0_49 = arith.constant 0 : index
    %c0_50 = arith.constant 0 : index
    %c0_51 = arith.constant 0 : index
    %112 = vector.load %arg12[%c0_49, %c0_50, %c0_51] : memref<1x1x64xf32, #tpu.memory_space<vmem>>, vector<1x1x64xf32>
    %113 = vector.shape_cast %112 : vector<1x1x64xf32> to vector<1x64xf32>
    %114 = vector.broadcast %113 : vector<1x64xf32> to vector<16x64xf32>
    %115 = arith.addf %111, %114 : vector<16x64xf32>
    %cst_52 = arith.constant 5.000000e-01 : f32
    %116 = vector.broadcast %cst_52 : f32 to vector<16x64xf32>
    %117 = arith.mulf %116, %115 : vector<16x64xf32>
    %cst_53 = arith.constant 4.471500e-02 : f32
    %118 = vector.broadcast %cst_53 : f32 to vector<16x64xf32>
    %119 = arith.mulf %118, %115 : vector<16x64xf32>
    %120 = arith.mulf %119, %115 : vector<16x64xf32>
    %121 = arith.mulf %120, %115 : vector<16x64xf32>
    %122 = arith.addf %115, %121 : vector<16x64xf32>
    %cst_54 = arith.constant 0.797884583 : f32
    %123 = vector.broadcast %cst_54 : f32 to vector<16x64xf32>
    %124 = arith.mulf %123, %122 : vector<16x64xf32>
    %125 = math.tanh %124 : vector<16x64xf32>
    %cst_55 = arith.constant 1.000000e+00 : f32
    %126 = vector.broadcast %cst_55 : f32 to vector<16x64xf32>
    %127 = arith.addf %126, %125 : vector<16x64xf32>
    %128 = arith.mulf %117, %127 : vector<16x64xf32>
    %129 = arith.truncf %128 : vector<16x64xf32> to vector<16x64xbf16>
    %c0_56 = arith.constant 0 : index
    %c0_57 = arith.constant 0 : index
    %c0_58 = arith.constant 0 : index
    %130 = vector.load %arg13[%c0_56, %c0_57, %c0_58] : memref<1x64x32xbf16, #tpu.memory_space<vmem>>, vector<1x64x32xbf16>
    %131 = vector.shape_cast %130 : vector<1x64x32xbf16> to vector<64x32xbf16>
    %cst_59 = arith.constant dense<0.000000e+00> : vector<16x32xf32>
    %132 = tpu.matmul %129, %131, %cst_59 {dimension_numbers = #tpu.dot_dimension_numbers<[1], [0], [0], [1], [0, 0, 1, 1], [], []>} : vector<16x64xbf16>, vector<64x32xbf16>, vector<16x32xf32> -> vector<16x32xf32>
    %c0_60 = arith.constant 0 : index
    %c0_61 = arith.constant 0 : index
    %c0_62 = arith.constant 0 : index
    %133 = vector.load %arg14[%c0_60, %c0_61, %c0_62] : memref<1x1x32xf32, #tpu.memory_space<vmem>>, vector<1x1x32xf32>
    %134 = vector.shape_cast %133 : vector<1x1x32xf32> to vector<1x32xf32>
    %135 = vector.broadcast %134 : vector<1x32xf32> to vector<16x32xf32>
    %136 = arith.addf %132, %135 : vector<16x32xf32>
    %137 = arith.addf %136, %107 : vector<16x32xf32>
    %c0_63 = arith.constant 0 : index
    %c0_64 = arith.constant 0 : index
    %c0_65 = arith.constant 0 : index
    %138 = vector.load %arg15[%c0_63, %c0_64, %c0_65] : memref<1x1x32xf32, #tpu.memory_space<vmem>>, vector<1x1x32xf32>
    %139 = vector.shape_cast %138 : vector<1x1x32xf32> to vector<1x32xf32>
    %c0_66 = arith.constant 0 : index
    %c0_67 = arith.constant 0 : index
    %c0_68 = arith.constant 0 : index
    %140 = vector.load %arg16[%c0_66, %c0_67, %c0_68] : memref<1x1x32xf32, #tpu.memory_space<vmem>>, vector<1x1x32xf32>
    %141 = vector.shape_cast %140 : vector<1x1x32xf32> to vector<1x32xf32>
    %cst_69 = arith.constant dense<0.000000e+00> : vector<16xf32>
    %142 = vector.multi_reduction <add>, %137, %cst_69 [1] : vector<16x32xf32> to vector<16xf32>
    %143 = vector.shape_cast %142 : vector<16xf32> to vector<16x1xf32>
    %cst_70 = arith.constant 3.200000e+01 : f32
    %144 = vector.broadcast %cst_70 : f32 to vector<16x1xf32>
    %145 = arith.divf %143, %144 : vector<16x1xf32>
    %146 = vector.broadcast %145 : vector<16x1xf32> to vector<16x32xf32>
    %147 = arith.subf %137, %146 : vector<16x32xf32>
    %148 = arith.mulf %147, %147 : vector<16x32xf32>
    %cst_71 = arith.constant dense<0.000000e+00> : vector<16xf32>
    %149 = vector.multi_reduction <add>, %148, %cst_71 [1] : vector<16x32xf32> to vector<16xf32>
    %150 = vector.shape_cast %149 : vector<16xf32> to vector<16x1xf32>
    %cst_72 = arith.constant 3.200000e+01 : f32
    %151 = vector.broadcast %cst_72 : f32 to vector<16x1xf32>
    %152 = arith.divf %150, %151 : vector<16x1xf32>
    %cst_73 = arith.constant 9.99999996E-13 : f32
    %153 = vector.broadcast %cst_73 : f32 to vector<16x1xf32>
    %154 = arith.addf %152, %153 : vector<16x1xf32>
    %155 = math.rsqrt %154 : vector<16x1xf32>
    %156 = vector.broadcast %155 : vector<16x1xf32> to vector<16x32xf32>
    %157 = arith.mulf %147, %156 : vector<16x32xf32>
    %158 = vector.broadcast %139 : vector<1x32xf32> to vector<16x32xf32>
    %159 = arith.mulf %157, %158 : vector<16x32xf32>
    %160 = vector.broadcast %141 : vector<1x32xf32> to vector<16x32xf32>
    %161 = arith.addf %159, %160 : vector<16x32xf32>
    %c0_74 = arith.constant 0 : index
    %c0_75 = arith.constant 0 : index
    %162 = vector.load %arg21[%c0_74, %c0_75] : memref<16x32xf32, #tpu.memory_space<vmem>>, vector<16x32xf32>
    tpu.vector_store %arg21[%c0_74, %c0_75], %161 {strides = array<i32>} : memref<16x32xf32, #tpu.memory_space<vmem>>, vector<16x32xf32>,
    %c1_i32 = arith.constant 1 : i32
    %163 = arith.cmpi eq, %arg0, %c1_i32 : i32
    %164 = arith.extui %163 : i1 to i32
    %c0_i32_76 = arith.constant 0 : i32
    %165 = arith.cmpi ne, %164, %c0_i32_76 : i32
    scf.if %165 {
      %166 = vector.shape_cast %161 : vector<16x32xf32> to vector<2x8x32xf32>
      %167 = vector.extract_strided_slice %166 {offsets = [0, 0, 0], sizes = [2, 1, 32], strides = [1, 1, 1]} : vector<2x8x32xf32> to vector<2x1x32xf32>
      %168 = vector.shape_cast %167 : vector<2x1x32xf32> to vector<2x32xf32>
      %169 = arith.truncf %168 : vector<2x32xf32> to vector<2x32xbf16>
      %c0_77 = arith.constant 0 : index
      %c0_78 = arith.constant 0 : index
      %170 = vector.load %arg17[%c0_77, %c0_78] : memref<32x32xbf16, #tpu.memory_space<vmem>>, vector<32x32xbf16>
      %cst_79 = arith.constant dense<0.000000e+00> : vector<2x32xf32>
      %171 = tpu.matmul %169, %170, %cst_79 {dimension_numbers = #tpu.dot_dimension_numbers<[1], [0], [0], [1], [0, 0, 1, 1], [], []>} : vector<2x32xbf16>, vector<32x32xbf16>, vector<2x32xf32> -> vector<2x32xf32>
      %c0_80 = arith.constant 0 : index
      %c0_81 = arith.constant 0 : index
      %172 = vector.load %arg18[%c0_80, %c0_81] : memref<1x32xf32, #tpu.memory_space<vmem>>, vector<1x32xf32>
      %173 = vector.broadcast %172 : vector<1x32xf32> to vector<2x32xf32>
      %174 = arith.addf %171, %173 : vector<2x32xf32>
      %175 = math.tanh %174 : vector<2x32xf32>
      %176 = arith.truncf %175 : vector<2x32xf32> to vector<2x32xbf16>
      %c0_82 = arith.constant 0 : index
      %c0_83 = arith.constant 0 : index
      %177 = vector.load %arg19[%c0_82, %c0_83] : memref<32x3xbf16, #tpu.memory_space<vmem>>, vector<32x3xbf16>
      %cst_84 = arith.constant dense<0.000000e+00> : vector<2x3xf32>
      %178 = tpu.matmul %176, %177, %cst_84 {dimension_numbers = #tpu.dot_dimension_numbers<[1], [0], [0], [1], [0, 0, 1, 1], [], []>} : vector<2x32xbf16>, vector<32x3xbf16>, vector<2x3xf32> -> vector<2x3xf32>
      %c0_85 = arith.constant 0 : index
      %c0_86 = arith.constant 0 : index
      %179 = vector.load %arg20[%c0_85, %c0_86] : memref<1x3xf32, #tpu.memory_space<vmem>>, vector<1x3xf32>
      %180 = vector.broadcast %179 : vector<1x3xf32> to vector<2x3xf32>
      %181 = arith.addf %178, %180 : vector<2x3xf32>
      %c0_87 = arith.constant 0 : index
      %c0_88 = arith.constant 0 : index
      %182 = vector.load %arg23[%c0_87, %c0_88] : memref<2x3xf32, #tpu.memory_space<vmem>>, vector<2x3xf32>
      tpu.vector_store %arg23[%c0_87, %c0_88], %181 {strides = array<i32>} : memref<2x3xf32, #tpu.memory_space<vmem>>, vector<2x3xf32>,
    } else {
    }
    return
  }
  func.func @transform_0(%arg0: i32) -> (i32, i32) {
    %c0_i32 = arith.constant 0 : i32
    %c0_i32_0 = arith.constant 0 : i32
    %c0_i32_1 = arith.constant 0 : i32
    return %c0_i32, %c0_i32_0 : i32, i32
  }
  func.func @transform_1(%arg0: i32) -> (i32, i32, i32) {
    %c0_i32 = arith.constant 0 : i32
    %c0_i32_0 = arith.constant 0 : i32
    %c0_i32_1 = arith.constant 0 : i32
    %c0_i32_2 = arith.constant 0 : i32
    return %c0_i32, %c0_i32_0, %c0_i32_1 : i32, i32, i32
  }
  func.func @transform_2(%arg0: i32) -> (i32, i32) {
    %c0_i32 = arith.constant 0 : i32
    %c0_i32_0 = arith.constant 0 : i32
    %c0_i32_1 = arith.constant 0 : i32
    return %c0_i32, %c0_i32_0 : i32, i32
  }
  func.func @transform_3(%arg0: i32) -> (i32, i32) {
    %c0_i32 = arith.constant 0 : i32
    %c0_i32_0 = arith.constant 0 : i32
    %c0_i32_1 = arith.constant 0 : i32
    return %c0_i32, %c0_i32_0 : i32, i32
  }
  func.func @transform_4(%arg0: i32) -> (i32, i32, i32) {
    %c0_i32 = arith.constant 0 : i32
    %c0_i32_0 = arith.constant 0 : i32
    %c0_i32_1 = arith.constant 0 : i32
    return %arg0, %c0_i32, %c0_i32_0 : i32, i32, i32
  }
  func.func @transform_5(%arg0: i32) -> (i32, i32, i32) {
    %c0_i32 = arith.constant 0 : i32
    %c0_i32_0 = arith.constant 0 : i32
    %c0_i32_1 = arith.constant 0 : i32
    return %arg0, %c0_i32, %c0_i32_0 : i32, i32, i32
  }
  func.func @transform_6(%arg0: i32) -> (i32, i32, i32) {
    %c0_i32 = arith.constant 0 : i32
    %c0_i32_0 = arith.constant 0 : i32
    %c0_i32_1 = arith.constant 0 : i32
    return %arg0, %c0_i32, %c0_i32_0 : i32, i32, i32
  }
  func.func @transform_7(%arg0: i32) -> (i32, i32, i32) {
    %c0_i32 = arith.constant 0 : i32
    %c0_i32_0 = arith.constant 0 : i32
    %c0_i32_1 = arith.constant 0 : i32
    return %arg0, %c0_i32, %c0_i32_0 : i32, i32, i32
  }
  func.func @transform_8(%arg0: i32) -> (i32, i32, i32) {
    %c0_i32 = arith.constant 0 : i32
    %c0_i32_0 = arith.constant 0 : i32
    %c0_i32_1 = arith.constant 0 : i32
    return %arg0, %c0_i32, %c0_i32_0 : i32, i32, i32
  }
  func.func @transform_9(%arg0: i32) -> (i32, i32, i32) {
    %c0_i32 = arith.constant 0 : i32
    %c0_i32_0 = arith.constant 0 : i32
    %c0_i32_1 = arith.constant 0 : i32
    return %arg0, %c0_i32, %c0_i32_0 : i32, i32, i32
  }
  func.func @transform_10(%arg0: i32) -> (i32, i32, i32) {
    %c0_i32 = arith.constant 0 : i32
    %c0_i32_0 = arith.constant 0 : i32
    %c0_i32_1 = arith.constant 0 : i32
    return %arg0, %c0_i32, %c0_i32_0 : i32, i32, i32
  }
  func.func @transform_11(%arg0: i32) -> (i32, i32, i32) {
    %c0_i32 = arith.constant 0 : i32
    %c0_i32_0 = arith.constant 0 : i32
    %c0_i32_1 = arith.constant 0 : i32
    return %arg0, %c0_i32, %c0_i32_0 : i32, i32, i32
  }
  func.func @transform_12(%arg0: i32) -> (i32, i32, i32) {
    %c0_i32 = arith.constant 0 : i32
    %c0_i32_0 = arith.constant 0 : i32
    %c0_i32_1 = arith.constant 0 : i32
    return %arg0, %c0_i32, %c0_i32_0 : i32, i32, i32
  }
  func.func @transform_13(%arg0: i32) -> (i32, i32, i32) {
    %c0_i32 = arith.constant 0 : i32
    %c0_i32_0 = arith.constant 0 : i32
    %c0_i32_1 = arith.constant 0 : i32
    return %arg0, %c0_i32, %c0_i32_0 : i32, i32, i32
  }
  func.func @transform_14(%arg0: i32) -> (i32, i32, i32) {
    %c0_i32 = arith.constant 0 : i32
    %c0_i32_0 = arith.constant 0 : i32
    %c0_i32_1 = arith.constant 0 : i32
    return %arg0, %c0_i32, %c0_i32_0 : i32, i32, i32
  }
  func.func @transform_15(%arg0: i32) -> (i32, i32, i32) {
    %c0_i32 = arith.constant 0 : i32
    %c0_i32_0 = arith.constant 0 : i32
    %c0_i32_1 = arith.constant 0 : i32
    return %arg0, %c0_i32, %c0_i32_0 : i32, i32, i32
  }
  func.func @transform_16(%arg0: i32) -> (i32, i32) {
    %c0_i32 = arith.constant 0 : i32
    %c0_i32_0 = arith.constant 0 : i32
    %c0_i32_1 = arith.constant 0 : i32
    return %c0_i32, %c0_i32_0 : i32, i32
  }
  func.func @transform_17(%arg0: i32) -> (i32, i32) {
    %c0_i32 = arith.constant 0 : i32
    %c0_i32_0 = arith.constant 0 : i32
    %c0_i32_1 = arith.constant 0 : i32
    return %c0_i32, %c0_i32_0 : i32, i32
  }
  func.func @transform_18(%arg0: i32) -> (i32, i32) {
    %c0_i32 = arith.constant 0 : i32
    %c0_i32_0 = arith.constant 0 : i32
    %c0_i32_1 = arith.constant 0 : i32
    return %c0_i32, %c0_i32_0 : i32, i32
  }
  func.func @transform_19(%arg0: i32) -> (i32, i32) {
    %c0_i32 = arith.constant 0 : i32
    %c0_i32_0 = arith.constant 0 : i32
    %c0_i32_1 = arith.constant 0 : i32
    return %c0_i32, %c0_i32_0 : i32, i32
  }
  func.func @transform_20(%arg0: i32) -> (i32, i32) {
    %c0_i32 = arith.constant 0 : i32
    %c0_i32_0 = arith.constant 0 : i32
    %c0_i32_1 = arith.constant 0 : i32
    return %c0_i32, %c0_i32_0 : i32, i32
  }
  func.func @transform_21(%arg0: i32) -> (i32, i32, i32, i32) {
    %c0_i32 = arith.constant 0 : i32
    %c0_i32_0 = arith.constant 0 : i32
    %c0_i32_1 = arith.constant 0 : i32
    %c0_i32_2 = arith.constant 0 : i32
    return %arg0, %c0_i32, %c0_i32_0, %c0_i32_1 : i32, i32, i32, i32
  }
  func.func @transform_22(%arg0: i32) -> (i32, i32) {
    %c0_i32 = arith.constant 0 : i32
    %c0_i32_0 = arith.constant 0 : i32
    %c0_i32_1 = arith.constant 0 : i32
    return %c0_i32, %c0_i32_0 : i32, i32
  }
}

</mosaic_0001>

<bundles_post_ra>
// kernel: bert_for_glue_simple.1
= control target key start
LH: loop header
LB: loop body
LE: loop exit
PB: predicated region body
PF: predicated region fallthrough
CT: control target
= control target key end

     0   :  { %s2415_s0 = inlined_call_operand.vmem [shape: f32[16,32], index: 0, kind: input, shape index: {}]   ;;  %s2416_s1 = inlined_call_operand.vmem [shape: f32[2,1,8], index: 1, kind: input, shape index: {}]   ;;  %s2417_s2 = inlined_call_operand.vmem [shape: f32[1,32], index: 2, kind: input, shape index: {}]   ;;  %s2418_s3 = inlined_call_operand.vmem [shape: f32[1,32], index: 3, kind: input, shape index: {}]   ;;  %s2419_s4 = inlined_call_operand.vmem [shape: bf16[2,32,96], index: 4, kind: input, shape index: {}]   ;;  %s2420_s5 = inlined_call_operand.vmem [shape: f32[2,1,96], index: 5, kind: input, shape index: {}]   ;;  %s2421_s6 = inlined_call_operand.vmem [shape: bf16[2,32,32], index: 6, kind: input, shape index: {}]   ;;  %s2422_s7 = inlined_call_operand.vmem [shape: f32[2,1,32], index: 7, kind: input, shape index: {}]   ;;  %s2423_s8 = inlined_call_operand.vmem [shape: f32[2,1,32], index: 8, kind: input, shape index: {}]   ;;  %s2424_s9 = inlined_call_operand.vmem [shape: f32[2,1,32], index: 9, kind: input, shape index: {}]   ;;  %s2425_s10 = inlined_call_operand.vmem [shape: bf16[2,32,64], index: 10, kind: input, shape index: {}]   ;;  %s2426_s11 = inlined_call_operand.vmem [shape: f32[2,1,64], index: 11, kind: input, shape index: {}]   ;;  %s2427_s12 = inlined_call_operand.vmem [shape: bf16[2,64,32], index: 12, kind: input, shape index: {}]   ;;  %s2428_s13 = inlined_call_operand.vmem [shape: f32[2,1,32], index: 13, kind: input, shape index: {}]   ;;  %s2429_s14 = inlined_call_operand.vmem [shape: f32[2,1,32], index: 14, kind: input, shape index: {}]   ;;  %s2430_s15 = inlined_call_operand.vmem [shape: f32[2,1,32], index: 15, kind: input, shape index: {}]   ;;  %s2431_s16 = inlined_call_operand.vmem [shape: bf16[32,32], index: 16, kind: input, shape index: {}]   ;;  %s2432_s17 = inlined_call_operand.vmem [shape: f32[1,32], index: 17, kind: input, shape index: {}]   ;;  %s2433_s18 = inlined_call_operand.vmem [shape: bf16[32,3], index: 18, kind: input, shape index: {}]   ;;  %s2434_s19 = inlined_call_operand.vmem [shape: f32[1,3], index: 19, kind: input, shape index: {}]   ;;  %s2435_s20 = inlined_call_operand.hbm [shape: f32[16,32], index: 20, kind: output, shape index: {0}]   ;;  %s2436_s21 = inlined_call_operand.vmem [shape: f32[4,2,8,8], index: 21, kind: output, shape index: {1}]   ;;  %s2437_s22 = inlined_call_operand.vmem [shape: f32[2,3], index: 22, kind: output, shape index: {2}]  }
   0x1   :  { %2444 = sst [smem:[#allocation7_spill]] %s2415_s0 }
   0x2   :  { %2445 = sst [smem:[#allocation8_spill]] %s2416_s1 }
   0x3   :  { %2446 = sst [smem:[#allocation9_spill]] %s2417_s2 }
   0x4   :  { %2447 = sst [smem:[#allocation10_spill]] %s2418_s3 }
   0x5   :  { %2448 = sst [smem:[#allocation11_spill]] %s2419_s4 }
   0x6   :  { %2449 = sst [smem:[#allocation12_spill]] %s2420_s5 }
   0x7   :  { %2450 = sst [smem:[#allocation13_spill]] %s2421_s6 }
   0x8   :  { %2451 = sst [smem:[#allocation14_spill]] %s2425_s10 }
   0x9   :  { %2452 = sst [smem:[#allocation15_spill]] %s2431_s16 }
   0xa   :  { %2453 = sst [smem:[#allocation16_spill]] %s2432_s17 }
   0xb   :  { %2454 = sst [smem:[#allocation17_spill]] %s2433_s18 }
   0xc   :  { %2455 = sst [smem:[#allocation18_spill]] %s2434_s19 }
   0xd   :  { %2456 = sst [smem:[#allocation19_spill]] %s2435_s20 }
   0xe   :  { %2457 = sst [smem:[#allocation20_spill]] %s2437_s22 }
   0xf   :  { %28 = vsyncpa [#allocation3], 0  ;;  %s2158_s3 = smov 0  }
  0x10 LB: > { %2458 = sst [smem:[#allocation5_spill]] %s2030_s3  ;;  %s2164_s28 = sadd.s32 4294967295, %s2030_s3   ;;  %s2030_s3 = sphi %s2158_s3, %s34_s3  }
  0x11   : > { %2459 = sst [smem:[#allocation6_spill]] %s2164_s28  ;;  %p1801_p0 = scmp.ge.s32.totalorder %s2030_s3, 1 }
  0x12   : > { %p702_p1 = scmp.lt.s32.totalorder %s2030_s3, 3 }
  0x14   : > { %p703_p2 = pnand %p1801_p0, %p702_p1 }
  0x15   : > { %p804_p3 = scmp.lt.s32.totalorder (!%p703_p2), %s2164_s28, 1  ;;  %s1810_s29 = sshll.u32 (!%p703_p2), %s2164_s28, 1 }
  0x16   : > { %706 = sbr.rel (%p703_p2) target bundleno = 2508 (0x9cc), region = 100  ;;  %p849_p4 = scmp.lt.s32.totalorder (!%p703_p2), %s1810_s29, 3 }
  0x17   : > { %s2461_s25 = sld [smem:[#allocation11_spill]] (!%p703_p2) }
  0x18   : > { %s2462_s3 = sld [smem:[#allocation13_spill]] (!%p703_p2) }
  0x19   : > { %s2463_s10 = sld [smem:[#allocation14_spill]] (!%p703_p2) }
  0x1b   : > { %s2171_s30 = scalar_select %p804_p3, %s2164_s28, 1 }
  0x1c   : > { %s2485_s29 = smov (!%p849_p4, %s1810_s29), 3 }
  0x1d   : > { %s1891_s4 = sshll.u32 %s2171_s30, 4  ;;  %s1894_s5 = sshll.u32 %s2171_s30, 5 }
  0x1e   : > { %s2181_s26 = scalar_lea.vmem %s2461_s25, %s1891_s4  ;;  %s2186_s20 = scalar_lea.vmem %s2462_s3, %s1891_s4 }
  0x1f   : > { %s2203_s25 = scalar_lea.vmem %s2463_s10, %s1891_s4  ;;  %s2213_s17 = scalar_lea.vmem %s2427_s12, %s1894_s5 }
  0x20   : > { %s841_s0 = scalar_lea.vmem %s2428_s13, %s2171_s30  ;;  %s844_s24 = scalar_lea.vmem %s2429_s14, %s2171_s30 }
  0x21   : > { %s847_s28 = scalar_lea.vmem %s2430_s15, %s2171_s30  ;;  %s1895_s2 = sshll.u32 %s2485_s29, 4 }
  0x22   : > { %s2230_s10 = scalar_lea.vmem %s2436_s21, %s1895_s2  ;;  %s2464_s5 = sld [smem:[#allocation6_spill]] }
  0x28   : > { %p1813_p5 = scmp.ne.s32.totalorder %s2464_s5, 0 }
  0x29   : > { %s2465_s16 = sld [smem:[#allocation7_spill]] (!%p1813_p5) }
  0x2a   : > { %859 = sbr.rel (%p1813_p5) target bundleno = 325 (0x145), region = 104  ;;  %s2466_s23 = sld [smem:[#allocation9_spill]] (!%p1813_p5) }
  0x2b   : > { %s2467_s2 = sld [smem:[#allocation10_spill]] (!%p1813_p5) }
  0x2f   : > { %v860_v0 = vld [vmem:[%s2465_s16] sm:$0xff]  ;;  %vm864_vm0 = vcmask 261120   ;;  %v861_v2 = vld [vmem:[%s2465_s16 + $0x8] sm:$0xff]  ;;  %v2032_v4 = vmov 32.0  }
  0x30   : > { %v865_v1 = vsel %vm864_vm0, %v860_v0, 0.0  ;;  %v868_v3 = vsel %vm864_vm0, %v861_v2, 0.0  ;;  %1937 = vrcp.f32 %v2032_v4  ;;  %v1935_v35 = vld [vmem:[%s2466_s23] ss:$0 sm:$0xff] }
  0x31   : > { %866 = vadd.xlane.f32.xlu0 %v865_v1  ;;  %v1936_v38 = vld [vmem:[%s2467_s2] ss:$0 sm:$0xff] }
  0x36   : > { %v1938_v5 = vpop.eup %1937 }
  0x37   : > { %v872_v6 = vmul.f32 32.0, %v1938_v5  ;;  %vm876_vm1 = vweird.f32 %v1938_v5 }
  0x39   : > { %869 = vadd.xlane.f32.xlu0 %v868_v3  ;;  %v873_v7 = vsub.f32 1.0, %v872_v6 }
  0x3b   : > { %v874_v8 = vmul.f32 %v1938_v5, %v873_v7 }
  0x3d   : > { %v875_v9 = vadd.f32 %v1938_v5, %v874_v8 }
  0x3f   : > { %v877_v10 = vsel %vm876_vm1, %v1938_v5, %v875_v9 }
  0xa4   : > { %v867_v11 = vpop.xlane.xlu0 %866 }
  0xa5   : > { %v878_v12 = vmul.f32 %v877_v10, %v867_v11 }
  0xa7   : > { %v880_v13 = vsub.f32 %v860_v0, %v878_v12 }
  0xa9   : > { %v882_v14 = vmul.f32 %v880_v13, %v880_v13 }
  0xab   : > { %v884_v15 = vsel %vm864_vm0, %v882_v14, 0.0 }
  0xac   : > { %885 = vadd.xlane.f32.xlu1 %v884_v15  ;;  %v870_v16 = vpop.xlane.xlu0 %869 }
  0xad   : > { %v879_v17 = vmul.f32 %v877_v10, %v870_v16 }
  0xaf   : > { %v881_v18 = vsub.f32 %v861_v2, %v879_v17 }
  0xb1   : > { %v883_v19 = vmul.f32 %v881_v18, %v881_v18 }
  0xb3   : > { %v887_v20 = vsel %vm864_vm0, %v883_v19, 0.0 }
  0xb4   : > { %888 = vadd.xlane.f32.xlu1 %v887_v20 }
 0x11f   : > { %v886_v21 = vpop.xlane.xlu1 %885 }
 0x120   : > { %v890_v22 = vmul.f32 %v886_v21, %v877_v10 }
 0x122   : > { %v892_v23 = vadd.f32 1e-12, %v890_v22 }
 0x124   : > { %1939 = vrsqrt.f32 %v892_v23  ;;  %vm900_vm3 = vweird.f32 %v892_v23 }
 0x127   : > { %v889_v24 = vpop.xlane.xlu1 %888 }
 0x128   : > { %v891_v25 = vmul.f32 %v889_v24, %v877_v10 }
 0x12a   : > { %v1940_v26 = vpop.eup %1939  ;;  %v893_v27 = vadd.f32 1e-12, %v891_v25 }
 0x12b   : > { %v895_v28 = vmul.f32 %v1940_v26, %v892_v23  ;;  %vm901_vm2 = vweird.f32 %v1940_v26 }
 0x12c   : > { %1941 = vrsqrt.f32 %v893_v27  ;;  %vm902_vm4 = vmor %vm900_vm3, %vm901_vm2  ;;  %vm910_vm6 = vweird.f32 %v893_v27 }
 0x12d   : > { %v896_v29 = vmul.f32 %v1940_v26, %v895_v28 }
 0x12f   : > { %v897_v30 = vmul.f32 0.5, %v896_v29 }
 0x131   : > { %v898_v31 = vsub.f32 1.5, %v897_v30 }
 0x132   : > { %v1942_v32 = vpop.eup %1941 }
 0x133   : > { %v899_v33 = vmul.f32 %v1940_v26, %v898_v31  ;;  %v905_v34 = vmul.f32 %v1942_v32, %v893_v27  ;;  %vm911_vm5 = vweird.f32 %v1942_v32 }
 0x134   : > { %vm912_vm7 = vmor %vm910_vm6, %vm911_vm5 }
 0x135   : > { %v903_v36 = vsel %vm902_vm4, %v1940_v26, %v899_v33  ;;  %v906_v37 = vmul.f32 %v1942_v32, %v905_v34 }
 0x136   : > { %v914_v39 = vmul.f32 %v903_v36, %v880_v13 }
 0x137   : > { %v907_v40 = vmul.f32 0.5, %v906_v37 }
 0x138   : > { %v919_v41 = vmul.f32 %v1935_v35, %v914_v39 }
 0x139   : > { %v908_v42 = vsub.f32 1.5, %v907_v40 }
 0x13a   : > { %v924_v43 = vadd.f32 %v1936_v38, %v919_v41 }
 0x13b   : > { %v909_v44 = vmul.f32 %v1942_v32, %v908_v42 }
 0x13c   : > { %926 = vst.msk [vmem:[#allocation2] sm:$0xff] %vm864_vm0, %v924_v43 }
 0x13d   : > { %v913_v45 = vsel %vm912_vm7, %v1942_v32, %v909_v44 }
 0x13e   : > { %v915_v46 = vmul.f32 %v913_v45, %v881_v18 }
 0x140   : > { %v920_v47 = vmul.f32 %v1935_v35, %v915_v46 }
 0x142   : > { %v925_v48 = vadd.f32 %v1936_v38, %v920_v47 }
 0x144   : > { %927 = vst.msk [vmem:[#allocation2 + $0x8] sm:$0xff] %vm864_vm0, %v925_v48 }
 0x145 PF: > { %v1897_v49 = vld [vmem:[%s2181_s26 + $0x8] sm:$0xff]  ;;  %v1896_v50 = vld [vmem:[%s2181_s26] sm:$0xff]  ;;  %vm951_vm8 = vcmask 261120   ;;  %s2468_s19 = sld [smem:[#allocation12_spill]]  ;;  %s2033_s26 = smov 80   ;;  %vm988_vm9 = vcmask 130048  }
 0x146   : > { %v2253_v51 = vld [vmem:[#allocation2] sm:$0xff]  ;;  %961 = vmatpush.bf16.msra.mxu0 %v1897_v49  ;;  %s2034_s1 = smov 96   ;;  %s2035_s18 = smov 112   ;;  %vm1032_vm10 = vcmask 64512   ;;  %vm1064_vm11 = vcmask 1043456   ;;  %vm1429_vm3 = vcmask 523264  }
 0x147   : > { %s2470_s23 = sld [smem:[#allocation8_spill]]  ;;  %s2036_s2 = smov 64  }
 0x148   : > { %s2037_s3 = smov 48   ;;  %s2473_s29 = scalar_lea.vmem %s2424_s9, %s2171_s30 }
 0x149   : > { %s2474_s6 = scalar_lea.vmem %s2426_s11, %s2171_s30 }
 0x14a   : > { %962 = vmatpush.bf16.msra.mxu0 %v1896_v50 }
 0x14b   : > { %v2255_v52 = vld [vmem:[#allocation2 + $0x8] sm:$0xff]  ;;  %s2469_s22 = scalar_lea.vmem %s2468_s19, %s2171_s30  ;;  %s2471_s19 = scalar_lea.vmem %s2422_s7, %s2171_s30 }
 0x14c   : > { %v930_v53 = vpack.c.bf16 %v2255_v52, %v2253_v51  ;;  %v1948_v54 = vld [vmem:[%s2469_s22] ss:$0 sm:$0xff] }
 0x14d   : > { %v1949_v19 = vld [vmem:[%s2470_s23] ss:$0 sm:$0xff]  ;;  %v1950_v28 = vld [vmem:[%s2470_s23 + $0x1] ss:$0 sm:$0xff] }
 0x14e   : > { %1822 = vmatmul.msk.bf16.vlgmr.msra.gmra.mxu0 %vm951_vm8, %v930_v53 }
 0x1cb   : > { %v964_v55 = vpop.f32.mrf.mxu0 }
 0x1cc   : > { %v965_v56 = vadd.f32 %v1948_v54, %v964_v55 }
 0x1ce   : > { %v971_v57 = vmul.f32 0.25, %v965_v56  ;;  %v975_v58 = vpack.c.bf16 %v965_v56, %v965_v56 }
 0x1d0   : > { %v973_v59 = vpack.c.bf16 %v971_v57, %v971_v57  ;;  %v984_v60 = vunpack.c.l.b16 %v975_v58 }
 0x1d2   : > { %v2265_v61 = vpack.c.b16 %v984_v60, %v984_v60  ;;  %v1103_v62 = vunpack.c.l.b16 %v973_v59 }
 0x1d3   : > { %v966_v63 = vpop.f32.mrf.mxu0 }
 0x1d4   : > { %v967_v0 = vadd.f32 %v1948_v54, %v966_v63  ;;  %1107 = vrot.lane.b32.xlu1 %v2265_v61, %s2033_s26  ;;  %986 = vrot.lane.b32.xlu0 %v2265_v61, %s2034_s1  ;;  %v1104_v1 = vpack.c.b16 %v1103_v62, %v1103_v62 }
 0x1d6   : > { %v972_v2 = vmul.f32 0.25, %v967_v0  ;;  %v976_v3 = vpack.c.bf16 %v967_v0, %v967_v0  ;;  %1105 = vrot.lane.b32.xlu2 %v1104_v1, %s2035_s18 }
 0x1d8   : > { %v974_v4 = vpack.c.bf16 %v972_v2, %v972_v2  ;;  %v1009_v5 = vunpack.c.l.b16 %v976_v3 }
 0x1da   : > { %v2269_v6 = vpack.c.b16 %v1009_v5, %v1009_v5  ;;  %v1129_v7 = vunpack.c.l.b16 %v974_v4 }
 0x1dc   : > { %1133 = vrot.lane.b32.xlu1 %v2269_v6, %s2033_s26  ;;  %1011 = vrot.lane.b32.xlu0 %v2269_v6, %s2034_s1  ;;  %v1130_v8 = vpack.c.b16 %v1129_v7, %v1129_v7  ;;  %s2472_s26 = scalar_lea.vmem %s2423_s8, %s2171_s30 }
 0x1de   : > { %1131 = vrot.lane.b32.xlu2 %v1130_v8, %s2035_s18 }
 0x230   : > { %v1106_v13 = vpop.permute.xlu2 %1105 }
 0x238   : > { %v1132_v18 = vpop.permute.xlu2 %1131 }
 0x246   : > { %v1108_v9 = vpop.permute.xlu1 %1107  ;;  %v987_v10 = vpop.permute.xlu0 %986 }
 0x247   : > { %v993_v11 = vsel %vm988_vm9, %v987_v10, 0  ;;  %v1113_v12 = vsel %vm988_vm9, %v1108_v9, 0 }
 0x248   : > { %1002 = vmatpush.bf16.xpose.msra.mxu1 %v993_v11  ;;  %1122 = vmatpush.bf16.xpose.msrb.mxu0 %v1113_v12 }
 0x24e   : > { %v1134_v14 = vpop.permute.xlu1 %1133  ;;  %v1012_v15 = vpop.permute.xlu0 %1011 }
 0x24f   : > { %1823 = vmatmul.msk.bf16.vlgmr.msra.gmra.mxu1 %vm988_vm9, %v973_v59  ;;  %1827 = vmatmul.msk.bf16.vlgmr.msrb.gmra.mxu0 %vm988_vm9, %v1106_v13  ;;  %v1017_v16 = vsel %vm988_vm9, %v1012_v15, 0  ;;  %v1139_v17 = vsel %vm988_vm9, %v1134_v14, 0 }
 0x250   : > { %1026 = vmatpush.bf16.xpose.msra.mxu2 %v1017_v16  ;;  %1148 = vmatpush.bf16.xpose.msrb.mxu1 %v1139_v17 }
 0x257   : > { %1824 = vmatmul.msk.bf16.vlgmr.msra.gmra.mxu2 %vm988_vm9, %v974_v4 }
 0x25f   : > { %1828 = vmatmul.msk.bf16.vlgmr.msrb.gmra.mxu1 %vm988_vm9, %v1132_v18 }
 0x2cc   : > { %v1004_v20 = vpop.f32.mrf.mxu1  ;;  %v1124_v21 = vpop.f32.mrf.mxu0 }
 0x2cd   : > { %v1005_v22 = vadd.f32 %v1949_v19, %v1004_v20  ;;  %v1125_v23 = vadd.f32 %v1949_v19, %v1124_v21  ;;  %v1899_v21 = vld [vmem:[%s2186_s20 + $0x8] sm:$0xff] }
 0x2ce   : > { %1263 = vmatpush.bf16.msra.mxu0 %v1899_v21 }
 0x2cf   : > { %1033 = vst.msk [vmem:[%s2230_s10] sm:$0xff] %vm1032_vm10, %v1005_v22  ;;  %v1157_v24 = vsel %vm1032_vm10, %v1125_v23, -inf  ;;  %v1035_v25 = vsel %vm1032_vm10, %v1005_v22, -inf }
 0x2d0   : > { %1829 = vst.msk [vmem:[%s2230_s10 + $0x10] sm:$0xff] %vm1032_vm10, %v1125_v23  ;;  %1158 = vmax.xlane.f32.xlu2 %v1157_v24  ;;  %1036 = vmax.xlane.f32.xlu0 %v1035_v25 }
 0x2d4   : > { %v1006_v26 = vpop.f32.mrf.mxu1  ;;  %v1126_v27 = vpop.f32.mrf.mxu0 }
 0x2da   : > { %v1028_v29 = vpop.f32.mrf.mxu2 }
 0x2db   : > { %v1029_v30 = vadd.f32 %v1950_v28, %v1028_v29 }
 0x2dc   : > { %v1150_v31 = vpop.f32.mrf.mxu1 }
 0x2dd   : > { %1034 = vst.msk [vmem:[%s2230_s10 + $0x8] sm:$0xff] %vm1032_vm10, %v1029_v30  ;;  %v1151_v32 = vadd.f32 %v1950_v28, %v1150_v31  ;;  %v1038_v33 = vsel %vm1032_vm10, %v1029_v30, -inf }
 0x2de   : > { %1039 = vmax.xlane.f32.xlu1 %v1038_v33 }
 0x2df   : > { %1830 = vst.msk [vmem:[%s2230_s10 + $0x18] sm:$0xff] %vm1032_vm10, %v1151_v32  ;;  %v1160_v34 = vsel %vm1032_vm10, %v1151_v32, -inf  ;;  %s2038_s10 = smov 16  }
 0x2e0   : > { %1161 = vmax.xlane.f32.xlu2 %v1160_v34 }
 0x2e2   : > { %v1030_v35 = vpop.f32.mrf.mxu2 }
 0x2e4   : > { %v1152_v36 = vpop.f32.mrf.mxu1  ;;  %1081 = vrot.lane.b32.xlu0 %v2269_v6, %s2036_s2 }
 0x2e5   : > { %v1951_v36 = vld [vmem:[%s2471_s19] ss:$0 sm:$0xff] }
 0x2f7   : > { %1059 = vrot.lane.b32.xlu1 %v2265_v61, %s2036_s2 }
 0x2ff   : > { %1181 = vrot.lane.b32.xlu1 %v2265_v61, %s2037_s3 }
 0x343   : > { %v1037_v37 = vpop.xlane.xlu0 %1036  ;;  %v1159_v42 = vpop.xlane.xlu2 %1158 }
 0x344   : > { %v1041_v38 = vsub.f32 %v1005_v22, %v1037_v37  ;;  %v1163_v45 = vsub.f32 %v1125_v23, %v1159_v42  ;;  %v1898_v22 = vld [vmem:[%s2186_s20] sm:$0xff] }
 0x345   : > { %1264 = vmatpush.bf16.msra.mxu0 %v1898_v22  ;;  %v1953_v22 = vld [vmem:[%s2473_s29] ss:$0 sm:$0xff] }
 0x346   : > { %v1043_v39 = vmul.f32 1.442695, %v1041_v38  ;;  %v1165_v47 = vmul.f32 1.442695, %v1163_v45  ;;  %v2039_v45 = vmov 32.0  }
 0x348   : > { %1958 = vpow2.f32 %v1043_v39 }
 0x34e   : > { %v1959_v40 = vpop.eup %1958 }
 0x34f   : > { %v1047_v41 = vsel %vm1032_vm10, %v1959_v40, 0.0 }
 0x350   : > { %1048 = vadd.xlane.f32.xlu0 %v1047_v41 }
 0x351   : > { %v1040_v43 = vpop.xlane.xlu1 %1039 }
 0x352   : > { %v1042_v44 = vsub.f32 %v1029_v30, %v1040_v43 }
 0x353   : > { %v1162_v48 = vpop.xlane.xlu2 %1161 }
 0x354   : > { %v1045_v46 = vmul.f32 1.442695, %v1042_v44  ;;  %v1164_v50 = vsub.f32 %v1151_v32, %v1162_v48 }
 0x356   : > { %1960 = vpow2.f32 %v1045_v46  ;;  %v1167_v54 = vmul.f32 1.442695, %v1164_v50  ;;  %v1082_v57 = vpop.permute.xlu0 %1081 }
 0x357   : > { %1962 = vpow2.f32 %v1165_v47  ;;  %v1087_v61 = vsel %vm1064_vm11, %v1082_v57, 0 }
 0x358   : > { %1964 = vpow2.f32 %v1167_v54 }
 0x35c   : > { %v1961_v49 = vpop.eup %1960 }
 0x35d   : > { %v1050_v53 = vsel %vm1032_vm10, %v1961_v49, 0.0  ;;  %v1963_v55 = vpop.eup %1962 }
 0x35e   : > { %1051 = vadd.xlane.f32.xlu2 %v1050_v53  ;;  %v1169_v56 = vsel %vm1032_vm10, %v1963_v55, 0.0  ;;  %v1965_v59 = vpop.eup %1964 }
 0x35f   : > { %v1172_v62 = vsel %vm1032_vm10, %v1965_v59, 0.0 }
 0x364   : > { %1202 = vrot.lane.b32.xlu0 %v2269_v6, %s2037_s3 }
 0x366   : > { %1170 = vadd.xlane.f32.xlu2 %v1169_v56 }
 0x369   : > { %v1060_v58 = vpop.permute.xlu1 %1059 }
 0x36a   : > { %v1066_v60 = vsel %vm1064_vm11, %v1060_v58, 0 }
 0x36b   : > { %1075 = vmatpush.bf16.msra.mxu3 %v1066_v60 }
 0x36e   : > { %1173 = vadd.xlane.f32.xlu2 %v1172_v62  ;;  %v1901_v62 = vld [vmem:[%s2203_s25 + $0x8] sm:$0xff] }
 0x36f   : > { %1096 = vmatpush.bf16.msrb.mxu3 %v1087_v61  ;;  %1366 = vmatpush.bf16.msra.mxu1 %v1901_v62 }
 0x371   : > { %v1182_v63 = vpop.permute.xlu1 %1181 }
 0x372   : > { %v1187_v0 = vsel %vm1064_vm11, %v1182_v63, 0 }
 0x373   : > { %1196 = vmatpush.bf16.msrb.mxu2 %v1187_v0 }
 0x3c3   : > { %v1049_v1 = vpop.xlane.xlu0 %1048 }
 0x3c4   : > { %1966 = vrcp.f32 %v1049_v1  ;;  %v1900_v1 = vld [vmem:[%s2203_s25] sm:$0xff] }
 0x3c5   : > { %1367 = vmatpush.bf16.msra.mxu1 %v1900_v1 }
 0x3ca   : > { %v1967_v2 = vpop.eup %1966 }
 0x3cb   : > { %v1055_v3 = vmul.f32 %v1967_v2, %v1959_v40 }
 0x3cd   : > { %v1057_v4 = vpack.c.bf16 %v1055_v3, %v1055_v3 }
 0x3cf   : > { %1825 = vmatmul.msk.bf16.vlgmr.msra.gmra.mxu3 %vm1032_vm10, %v1057_v4 }
 0x3d1   : > { %v1052_v5 = vpop.xlane.xlu2 %1051 }
 0x3d2   : > { %1968 = vrcp.f32 %v1052_v5 }
 0x3d6   : > { %v1203_v6 = vpop.permute.xlu0 %1202 }
 0x3d7   : > { %v1208_v8 = vsel %vm1064_vm11, %v1203_v6, 0 }
 0x3d8   : > { %v1969_v7 = vpop.eup %1968  ;;  %1217 = vmatpush.bf16.msra.mxu3 %v1208_v8 }
 0x3d9   : > { %v1171_v9 = vpop.xlane.xlu2 %1170  ;;  %v1056_v10 = vmul.f32 %v1969_v7, %v1961_v49 }
 0x3da   : > { %1970 = vrcp.f32 %v1171_v9 }
 0x3db   : > { %v1058_v11 = vpack.c.bf16 %v1056_v10, %v1056_v10 }
 0x3df   : > { %1826 = vmatmul.msk.bf16.vlgmr.msrb.gmra.mxu3 %vm1032_vm10, %v1058_v11 }
 0x3e0   : > { %v1971_v12 = vpop.eup %1970 }
 0x3e1   : > { %v1177_v13 = vmul.f32 %v1971_v12, %v1963_v55  ;;  %v1174_v14 = vpop.xlane.xlu2 %1173 }
 0x3e2   : > { %1972 = vrcp.f32 %v1174_v14 }
 0x3e3   : > { %v1179_v15 = vpack.c.bf16 %v1177_v13, %v1177_v13  ;;  %1974 = vrcp.f32 %v2039_v45 }
 0x3e5   : > { %1831 = vmatmul.msk.bf16.vlgmr.msrb.gmra.mxu2 %vm1032_vm10, %v1179_v15 }
 0x3e8   : > { %v1973_v16 = vpop.eup %1972 }
 0x3e9   : > { %v1178_v17 = vmul.f32 %v1973_v16, %v1965_v59  ;;  %v1975_v46 = vpop.eup %1974 }
 0x3ea   : > { %v1282_v47 = vmul.f32 32.0, %v1975_v46  ;;  %vm1286_vm12 = vweird.f32 %v1975_v46 }
 0x3eb   : > { %v1180_v18 = vpack.c.bf16 %v1178_v17, %v1178_v17 }
 0x3ec   : > { %v1283_v48 = vsub.f32 1.0, %v1282_v47 }
 0x3ee   : > { %v1284_v49 = vmul.f32 %v1975_v46, %v1283_v48 }
 0x3ef   : > { %1832 = vmatmul.msk.bf16.vlgmr.msra.gmra.mxu3 %vm1032_vm10, %v1180_v18  ;;  %v1952_v18 = vld [vmem:[%s2472_s26] ss:$0 sm:$0xff] }
 0x3f0   : > { %v1285_v50 = vadd.f32 %v1975_v46, %v1284_v49 }
 0x452   : > { %v1077_v19 = vpop.f32.mrf.mxu3 }
 0x45a   : > { %v1079_v20 = vpop.f32.mrf.mxu3 }
 0x462   : > { %v1098_v23 = vpop.f32.mrf.mxu3 }
 0x468   : > { %v1198_v24 = vpop.f32.mrf.mxu2 }
 0x46a   : > { %v1100_v25 = vpop.f32.mrf.mxu3 }
 0x470   : > { %v1200_v26 = vpop.f32.mrf.mxu2 }
 0x472   : > { %v1219_v27 = vpop.f32.mrf.mxu3 }
 0x473   : > { %v1943_v28 = vpack.i.bf16 %v1219_v27, %v1198_v24 }
 0x475   : > { %1944 = vrot.lane.b32.xlu2 %v1943_v28, %s2038_s10 }
 0x47a   : > { %v1221_v29 = vpop.f32.mrf.mxu3 }
 0x47b   : > { %v1905_v29 = vld [vmem:[%s2213_s17 + $0x18] sm:$0xff] }
 0x47c   : > { %1437 = vmatpush.bf16.msra.mxu2 %v1905_v29  ;;  %v1957_v29 = vld [vmem:[%s847_s28] ss:$0 sm:$0xff] }
 0x4cf   : > { %v1945_v30 = vpop.permute.xlu2 %1944 }
 0x4d0   : > { %v1947_v31 = vunpack.i.h.bf16 %v1945_v30  ;;  %v1946_v32 = vunpack.i.l.bf16 %v1945_v30  ;;  %v1904_v30 = vld [vmem:[%s2213_s17 + $0x10] sm:$0xff] }
 0x4d1   : > { %1438 = vmatpush.bf16.msra.mxu2 %v1904_v30 }
 0x4d2   : > { %v1232_v33 = vsel %vm988_vm9, %v1098_v23, %v1947_v31  ;;  %v1231_v34 = vsel %vm988_vm9, %v1077_v19, %v1946_v32  ;;  %v1903_v31 = vld [vmem:[%s2213_s17 + $0x8] sm:$0xff]  ;;  %v1902_v32 = vld [vmem:[%s2213_s17] sm:$0xff] }
 0x4d3   : > { %v1233_v35 = vpack.c.bf16 %v1232_v33, %v1231_v34  ;;  %v1954_v33 = vld [vmem:[%s2474_s6] ss:$0 sm:$0xff] }
 0x4d5   : > { %1841 = vmatmul.msk.bf16.vlgmr.msra.gmra.mxu0 %vm951_vm8, %v1233_v35  ;;  %1439 = vmatpush.bf16.msra.mxu2 %v1903_v31 }
 0x4d9   : > { %1440 = vmatpush.bf16.msra.mxu2 %v1902_v32 }
 0x552   : > { %v1266_v37 = vpop.f32.mrf.mxu0 }
 0x553   : > { %v1267_v38 = vadd.f32 %v1951_v36, %v1266_v37 }
 0x555   : > { %v1271_v39 = vadd.f32 %v1267_v38, %v2253_v51  ;;  %v2329_v51 = vsel %vm1286_vm12, %v1975_v46, %v1285_v50 }
 0x557   : > { %v1275_v40 = vsel %vm951_vm8, %v1271_v39, 0.0 }
 0x558   : > { %1276 = vadd.xlane.f32.xlu1 %v1275_v40 }
 0x55a   : > { %v1268_v41 = vpop.f32.mrf.mxu0 }
 0x55b   : > { %v1269_v42 = vadd.f32 %v1951_v36, %v1268_v41 }
 0x55d   : > { %v1272_v43 = vadd.f32 %v1269_v42, %v2255_v52 }
 0x55f   : > { %v1278_v44 = vsel %vm951_vm8, %v1272_v43, 0.0 }
 0x560   : > { %1279 = vadd.xlane.f32.xlu0 %v1278_v44 }
 0x5cb   : > { %v1277_v53 = vpop.xlane.xlu1 %1276 }
 0x5cc   : > { %v1288_v54 = vmul.f32 %v2329_v51, %v1277_v53 }
 0x5ce   : > { %v1290_v55 = vsub.f32 %v1271_v39, %v1288_v54 }
 0x5d0   : > { %v1292_v52 = vmul.f32 %v1290_v55, %v1290_v55 }
 0x5d2   : > { %v1294_v56 = vsel %vm951_vm8, %v1292_v52, 0.0 }
 0x5d3   : > { %v1280_v57 = vpop.xlane.xlu0 %1279  ;;  %1295 = vadd.xlane.f32.xlu2 %v1294_v56 }
 0x5d4   : > { %v1289_v58 = vmul.f32 %v2329_v51, %v1280_v57 }
 0x5d6   : > { %v1291_v59 = vsub.f32 %v1272_v43, %v1289_v58  ;;  %v1955_v58 = vld [vmem:[%s841_s0] ss:$0 sm:$0xff] }
 0x5d8   : > { %v1293_v60 = vmul.f32 %v1291_v59, %v1291_v59 }
 0x5da   : > { %v1297_v61 = vsel %vm951_vm8, %v1293_v60, 0.0 }
 0x5db   : > { %1298 = vadd.xlane.f32.xlu1 %v1297_v61 }
 0x646   : > { %v1296_v63 = vpop.xlane.xlu2 %1295 }
 0x647   : > { %v1300_v0 = vmul.f32 %v1296_v63, %v2329_v51 }
 0x649   : > { %v1302_v2 = vadd.f32 1e-12, %v1300_v0 }
 0x64b   : > { %1976 = vrsqrt.f32 %v1302_v2  ;;  %vm1310_vm14 = vweird.f32 %v1302_v2 }
 0x64e   : > { %v1299_v3 = vpop.xlane.xlu1 %1298 }
 0x64f   : > { %v1301_v4 = vmul.f32 %v1299_v3, %v2329_v51 }
 0x651   : > { %v1977_v5 = vpop.eup %1976  ;;  %v1303_v6 = vadd.f32 1e-12, %v1301_v4 }
 0x652   : > { %v1305_v7 = vmul.f32 %v1977_v5, %v1302_v2  ;;  %vm1311_vm13 = vweird.f32 %v1977_v5 }
 0x653   : > { %1978 = vrsqrt.f32 %v1303_v6  ;;  %vm1312_vm15 = vmor %vm1310_vm14, %vm1311_vm13  ;;  %vm1320_vm1 = vweird.f32 %v1303_v6 }
 0x654   : > { %v1306_v8 = vmul.f32 %v1977_v5, %v1305_v7 }
 0x656   : > { %v1307_v9 = vmul.f32 0.5, %v1306_v8 }
 0x658   : > { %v1308_v10 = vsub.f32 1.5, %v1307_v9 }
 0x659   : > { %v1979_v11 = vpop.eup %1978 }
 0x65a   : > { %v1309_v12 = vmul.f32 %v1977_v5, %v1308_v10  ;;  %v1315_v13 = vmul.f32 %v1979_v11, %v1303_v6  ;;  %vm1321_vm0 = vweird.f32 %v1979_v11 }
 0x65b   : > { %vm1322_vm2 = vmor %vm1320_vm1, %vm1321_vm0 }
 0x65c   : > { %v1316_v14 = vmul.f32 %v1979_v11, %v1315_v13  ;;  %v1313_v15 = vsel %vm1312_vm15, %v1977_v5, %v1309_v12 }
 0x65d   : > { %v1324_v19 = vmul.f32 %v1313_v15, %v1290_v55 }
 0x65e   : > { %v1317_v16 = vmul.f32 0.5, %v1316_v14 }
 0x65f   : > { %v1329_v23 = vmul.f32 %v1952_v18, %v1324_v19 }
 0x660   : > { %v1318_v17 = vsub.f32 1.5, %v1317_v16 }
 0x661   : > { %v1334_v26 = vadd.f32 %v1953_v22, %v1329_v23 }
 0x662   : > { %v1319_v20 = vmul.f32 %v1979_v11, %v1318_v17 }
 0x664   : > { %v1323_v21 = vsel %vm1322_vm2, %v1979_v11, %v1319_v20 }
 0x665   : > { %v1325_v24 = vmul.f32 %v1323_v21, %v1291_v59 }
 0x667   : > { %v1330_v25 = vmul.f32 %v1952_v18, %v1325_v24 }
 0x669   : > { %v1335_v27 = vadd.f32 %v1953_v22, %v1330_v25 }
 0x66b   : > { %v1336_v28 = vpack.c.bf16 %v1335_v27, %v1334_v26 }
 0x66d   : > { %1850 = vmatmul.msk.bf16.vlgmr.msra.gmra.mxu1 %vm951_vm8, %v1336_v28 }
 0x6ea   : > { %v1369_v34 = vpop.f32.mrf.mxu1 }
 0x6eb   : > { %v1370_v35 = vadd.f32 %v1954_v33, %v1369_v34 }
 0x6ed   : > { %v1376_v36 = vmul.f32 0.044715, %v1370_v35  ;;  %v1374_v53 = vmul.f32 0.5, %v1370_v35 }
 0x6ef   : > { %v1378_v37 = vmul.f32 %v1376_v36, %v1370_v35 }
 0x6f1   : > { %v1380_v38 = vmul.f32 %v1378_v37, %v1370_v35 }
 0x6f2   : > { %v1371_v39 = vpop.f32.mrf.mxu1 }
 0x6f3   : > { %v1382_v40 = vadd.f32 %v1380_v38, %v1370_v35  ;;  %v1372_v41 = vadd.f32 %v1954_v33, %v1371_v39 }
 0x6f5   : > { %v1377_v42 = vmul.f32 0.044715, %v1372_v41  ;;  %v1384_v43 = vmul.f32 0.7978846, %v1382_v40  ;;  %v1375_v54 = vmul.f32 0.5, %v1372_v41 }
 0x6f7   : > { %v1379_v44 = vmul.f32 %v1377_v42, %v1372_v41  ;;  %1980 = vtanh.f32 %v1384_v43 }
 0x6f9   : > { %v1381_v45 = vmul.f32 %v1379_v44, %v1372_v41 }
 0x6fb   : > { %v1383_v46 = vadd.f32 %v1381_v45, %v1372_v41 }
 0x6fd   : > { %v1385_v47 = vmul.f32 0.7978846, %v1383_v46  ;;  %v1981_v48 = vpop.eup %1980 }
 0x6fe   : > { %v1388_v49 = vadd.f32 1.0, %v1981_v48 }
 0x6ff   : > { %1982 = vtanh.f32 %v1385_v47 }
 0x700   : > { %v1390_v52 = vmul.f32 %v1388_v49, %v1374_v53 }
 0x705   : > { %v1983_v50 = vpop.eup %1982 }
 0x706   : > { %v1389_v55 = vadd.f32 1.0, %v1983_v50 }
 0x708   : > { %v1391_v56 = vmul.f32 %v1389_v55, %v1375_v54 }
 0x70a   : > { %v1392_v57 = vpack.c.bf16 %v1391_v56, %v1390_v52 }
 0x70c   : > { %1867 = vmatmul.msk.bf16.vlgmr.msra.gmra.mxu2 %vm1429_vm3, %v1392_v57 }
 0x78f   : > { %v1442_v59 = vpop.f32.mrf.mxu2 }
 0x790   : > { %v1443_v60 = vadd.f32 %v1955_v58, %v1442_v59 }
 0x792   : > { %v1447_v61 = vadd.f32 %v1443_v60, %v1334_v26 }
 0x794   : > { %v1451_v62 = vsel %vm951_vm8, %v1447_v61, 0.0 }
 0x795   : > { %1452 = vadd.xlane.f32.xlu0 %v1451_v62 }
 0x797   : > { %v1444_v63 = vpop.f32.mrf.mxu2 }
 0x798   : > { %v1445_v0 = vadd.f32 %v1955_v58, %v1444_v63 }
 0x79a   : > { %v1448_v1 = vadd.f32 %v1445_v0, %v1335_v27  ;;  %v1956_v27 = vld [vmem:[%s844_s24] ss:$0 sm:$0xff]  ;;  %s2475_s24 = sld [smem:[#allocation6_spill]] }
 0x79c   : > { %v1454_v2 = vsel %vm951_vm8, %v1448_v1, 0.0 }
 0x79d   : > { %1455 = vadd.xlane.f32.xlu1 %v1454_v2 }
 0x7a0   : > { %p1868_p6 = scmp.ne.s32.totalorder %s2475_s24, 1 }
 0x7a1   : > { %s2476_s5 = sld [smem:[#allocation15_spill]] (!%p1868_p6) }
 0x7a2   : > { %s2477_s1 = sld [smem:[#allocation17_spill]] (!%p1868_p6) }
 0x7a3   : > { %s2478_s6 = sld [smem:[#allocation16_spill]] (!%p1868_p6) }
 0x7a4   : > { %s2479_s0 = sld [smem:[#allocation18_spill]] (!%p1868_p6) }
 0x7a5   : > { %s2480_s20 = sld [smem:[#allocation20_spill]] (!%p1868_p6) }
 0x808   : > { %v1453_v3 = vpop.xlane.xlu0 %1452 }
 0x809   : > { %v1457_v4 = vmul.f32 %v1453_v3, %v2329_v51 }
 0x80b   : > { %v1459_v5 = vsub.f32 %v1447_v61, %v1457_v4 }
 0x80d   : > { %v1461_v6 = vmul.f32 %v1459_v5, %v1459_v5 }
 0x80f   : > { %v1463_v7 = vsel %vm951_vm8, %v1461_v6, 0.0 }
 0x810   : > { %v1456_v8 = vpop.xlane.xlu1 %1455  ;;  %1464 = vadd.xlane.f32.xlu0 %v1463_v7 }
 0x811   : > { %v1458_v9 = vmul.f32 %v1456_v8, %v2329_v51 }
 0x813   : > { %v1460_v10 = vsub.f32 %v1448_v1, %v1458_v9 }
 0x815   : > { %v1462_v11 = vmul.f32 %v1460_v10, %v1460_v10 }
 0x817   : > { %v1466_v12 = vsel %vm951_vm8, %v1462_v11, 0.0 }
 0x818   : > { %1467 = vadd.xlane.f32.xlu1 %v1466_v12 }
 0x883   : > { %v1465_v13 = vpop.xlane.xlu0 %1464 }
 0x884   : > { %v1469_v14 = vmul.f32 %v1465_v13, %v2329_v51 }
 0x886   : > { %v1471_v15 = vadd.f32 1e-12, %v1469_v14 }
 0x888   : > { %1984 = vrsqrt.f32 %v1471_v15  ;;  %vm1479_vm5 = vweird.f32 %v1471_v15 }
 0x88b   : > { %v1468_v16 = vpop.xlane.xlu1 %1467 }
 0x88c   : > { %v1470_v17 = vmul.f32 %v1468_v16, %v2329_v51 }
 0x88e   : > { %v1985_v18 = vpop.eup %1984  ;;  %v1472_v19 = vadd.f32 1e-12, %v1470_v17 }
 0x88f   : > { %v1474_v20 = vmul.f32 %v1985_v18, %v1471_v15  ;;  %vm1480_vm4 = vweird.f32 %v1985_v18 }
 0x890   : > { %1986 = vrsqrt.f32 %v1472_v19  ;;  %vm1481_vm6 = vmor %vm1479_vm5, %vm1480_vm4  ;;  %vm1489_vm9 = vweird.f32 %v1472_v19 }
 0x891   : > { %v1475_v21 = vmul.f32 %v1985_v18, %v1474_v20 }
 0x893   : > { %v1476_v22 = vmul.f32 0.5, %v1475_v21 }
 0x895   : > { %v1477_v23 = vsub.f32 1.5, %v1476_v22 }
 0x896   : > { %v1987_v24 = vpop.eup %1986 }
 0x897   : > { %v1478_v25 = vmul.f32 %v1985_v18, %v1477_v23  ;;  %v1484_v26 = vmul.f32 %v1987_v24, %v1472_v19  ;;  %vm1490_vm7 = vweird.f32 %v1987_v24 }
 0x898   : > { %vm1491_vm10 = vmor %vm1489_vm9, %vm1490_vm7 }
 0x899   : > { %v1482_v51 = vsel %vm1481_vm6, %v1985_v18, %v1478_v25  ;;  %v1485_v28 = vmul.f32 %v1987_v24, %v1484_v26 }
 0x89a   : > { %v1493_v30 = vmul.f32 %v1482_v51, %v1459_v5 }
 0x89b   : > { %v1486_v31 = vmul.f32 0.5, %v1485_v28 }
 0x89c   : > { %v1498_v32 = vmul.f32 %v1956_v27, %v1493_v30 }
 0x89d   : > { %v1487_v33 = vsub.f32 1.5, %v1486_v31 }
 0x89e   : > { %v1503_v34 = vadd.f32 %v1957_v29, %v1498_v32 }
 0x89f   : > { %v1488_v35 = vmul.f32 %v1987_v24, %v1487_v33 }
 0x8a0   : > { %1505 = vst.msk [vmem:[#allocation2] sm:$0xff] %vm951_vm8, %v1503_v34 }
 0x8a1   : > { %v1492_v36 = vsel %vm1491_vm10, %v1987_v24, %v1488_v35 }
 0x8a2   : > { %v1494_v37 = vmul.f32 %v1492_v36, %v1460_v10 }
 0x8a4   : > { %v1499_v38 = vmul.f32 %v1956_v27, %v1494_v37  ;;  %1510 = sbr.rel (%p1868_p6) target bundleno = 2497 (0x9c1), region = 108 }
 0x8a6   : > { %v1504_v39 = vadd.f32 %v1957_v29, %v1499_v38 }
 0x8a8   : > { %1506 = vst.msk [vmem:[#allocation2 + $0x8] sm:$0xff] %vm951_vm8, %v1504_v39 }
 0x8a9   : > { %v1907_v40 = vld [vmem:[%s2476_s5 + $0x8] sm:$0xff]  ;;  %v1511_v41 = vpack.c.bf16 %v1503_v34, %v1503_v34  ;;  %v1512_v42 = vpack.c.bf16 %v1504_v39, %v1504_v39  ;;  %v1906_v43 = vld [vmem:[%s2476_s5] sm:$0xff]  ;;  %vm1526_vm11 = vcmask 1041409   ;;  %vm1595_vm12 = vcmask 17408  }
 0x8aa   : > { %1550 = vmatpush.bf16.msra.mxu0 %v1907_v40  ;;  %v1909_v49 = vld [vmem:[%s2477_s1 + $0x8] sm:$0xff]  ;;  %v1908_v50 = vld [vmem:[%s2477_s1] sm:$0xff] }
 0x8ab   : > { %v1523_v44 = vunpack.c.l.b16 %v1511_v41  ;;  %v1524_v45 = vunpack.c.l.b16 %v1512_v42  ;;  %1588 = vmatpush.bf16.msra.mxu1 %v1909_v49  ;;  %v1988_v53 = vld [vmem:[%s2478_s6] ss:$0 sm:$0xff] }
 0x8ac   : > { %v1989_v58 = vld [vmem:[%s2479_s0] ss:$0 sm:$0xff] }
 0x8ad   : > { %v1525_v46 = vrot.slane %v1524_v45, 7 }
 0x8ae   : > { %1551 = vmatpush.bf16.msra.mxu0 %v1906_v43 }
 0x8af   : > { %v1527_v47 = vsel %vm1526_vm11, %v1525_v46, %v1523_v44  ;;  %1589 = vmatpush.bf16.msra.mxu1 %v1908_v50 }
 0x8b0   : > { %v1528_v48 = vpack.c.b16 %v1527_v47, %v1527_v47 }
 0x8b2   : > { %1877 = vmatmul.msk.bf16.vlgmr.msra.gmra.mxu0 %vm951_vm8, %v1528_v48 }
 0x92f   : > { %v1553_v54 = vpop.f32.mrf.mxu0 }
 0x930   : > { %v1554_v55 = vadd.f32 %v1988_v53, %v1553_v54 }
 0x932   : > { %1990 = vtanh.f32 %v1554_v55 }
 0x937   : > { %v1555_v52 = vpop.f32.mrf.mxu0 }
 0x938   : > { %v1991_v56 = vpop.eup %1990 }
 0x939   : > { %v1558_v57 = vpack.c.bf16 %v1991_v56, %v1991_v56 }
 0x93b   : > { %1886 = vmatmul.msk.bf16.vlgmr.msra.gmra.mxu1 %vm951_vm8, %v1558_v57 }
 0x9b8   : > { %v1591_v59 = vpop.f32.mrf.mxu1 }
 0x9b9   : > { %v1592_v60 = vadd.f32 %v1989_v58, %v1591_v59 }
 0x9bb   : > { %1596 = vst.msk [vmem:[%s2480_s20] sm:$0x3] %vm1595_vm12, %v1592_v60 }
 0x9c0   : > { %v1593_v61 = vpop.f32.mrf.mxu1 }
 0x9c1 PF: > { %s2481_s24 = sld [smem:[#allocation6_spill]]  ;;  %s2040_s28 = smov [#allocation2]  }
 0x9c2   : > { %s1608_s30 = sshll.u32 %s2040_s28, 4  ;;  %s2482_s22 = sld [smem:[#allocation19_spill]]  ;;  %s1609_s30 = int_to_ptr.vmem [resolvable:$true] %s1608_s30 }
 0x9c3   : > { %s2041_s18 = smov 128   ;;  %s2042_s29 = smov 8  }
 0x9c7   : > { %p1914_p7 = scmp.eq.s32.totalorder %s2481_s24, 1 }
 0x9c8   : > { %s1610_s26 = sshll.u32 %s2482_s22, 4  ;;  %s1611_s26 = int_to_ptr.hbm [resolvable:$true] %s1610_s26 }
 0x9c9   : > { %1911 = dma.vmem_to_hbm [thread:$0]  (%p1914_p7), %s1609_s30, 256, %s1611_s26, [#allocation3], %s2041_s18, %s2041_s18, %s2042_s29  }
 0x9ca   : > { %2025 = dma.done.wait (%p1914_p7), [#allocation3], 256  }
 0x9cb   : > { %2027 = vsyncadd (%p1914_p7), [#allocation3], 4294967040 }
 0x9cc PF: > { %s2483_s27 = sld [smem:[#allocation5_spill]] }
 0x9d2   : > { %s34_s3 = sadd.s32 1, %s2483_s27  }
 0x9d3   : > { %p31_p8 = scmp.ge.s32.totalorder %s34_s3, 4  }
 0x9d5   :  { %33 = sbr.rel (!%p31_p8) target bundleno = 16 (0x10), region = 189 }
 0x9da   :  { %1646 = vsyncpa [#allocation3], 1 }
 0x9db   :  { %1648 = vsyncpa [#allocation3 + $0x1], 1 }

</bundles_post_ra>
